<compile_context>
chip_gen: v6e
topology: v6e:2x2x1
jax: 0.10.0
libtpu: 0.0.40
codegen_flags: <defaults>
</compile_context>

<pallas_src>
import math
import functools

import jax
import jax.numpy as jnp
from jax import lax
from jax.experimental import pallas as pl
from jax.experimental.pallas import tpu as pltpu


# ----------------------------- math helpers -------------------------------

def _layernorm(x, w, b, eps):
    # TF-style layer norm (epsilon inside the sqrt), biased variance.
    u = jnp.mean(x, axis=-1, keepdims=True)
    s = jnp.mean((x - u) ** 2, axis=-1, keepdims=True)
    return w * ((x - u) / jnp.sqrt(s + eps)) + b


def _gelu(x):
    return 0.5 * x * (1.0 + jnp.tanh(math.sqrt(2.0 / math.pi)
                                     * (x + 0.044715 * x ** 3)))


def _mm(x_f32, w_bf16):
    # bf16 operands on the MXU, f32 accumulation.
    return jnp.dot(x_f32.astype(jnp.bfloat16), w_bf16,
                   preferred_element_type=jnp.float32)


def _flash_attn(q, k, v, n_head, tq, tk):
    """Causal attention over (T, D) q/k/v with key-block online softmax.

    Only (H, tq, tk) score tiles plus (H, tq, 1) running max/sum stats are live
    at any time (no (H, T, T) materialization).  Requires tq == tk and
    T % tq == 0; strictly-above-diagonal key tiles are skipped entirely.
    """
    T, D = q.shape
    H = n_head
    hd = D // H
    scale = 1.0 / math.sqrt(hd)

    kh = k.reshape(T, H, hd).transpose(1, 0, 2).astype(jnp.bfloat16)   # (H, T, hd)
    vh = v.reshape(T, H, hd).transpose(1, 0, 2).astype(jnp.bfloat16)

    n_q = T // tq
    out_tiles = []
    for qi in range(n_q):
        q_t = (q[qi * tq:(qi + 1) * tq, :]
               .reshape(tq, H, hd).transpose(1, 0, 2).astype(jnp.bfloat16))
        m = jnp.full((H, tq, 1), -1e30, jnp.float32)
        l = jnp.zeros((H, tq, 1), jnp.float32)
        acc = jnp.zeros((H, tq, hd), jnp.float32)
        for ki in range(qi + 1):                      # causal: only tiles on/below diag
            k_t = kh[:, ki * tk:(ki + 1) * tk, :]
            v_t = vh[:, ki * tk:(ki + 1) * tk, :]
            s = jnp.einsum('hqd,hkd->hqk', q_t, k_t,
                           preferred_element_type=jnp.float32) * scale
            if ki == qi:                              # diagonal tile: mask upper part
                rows = lax.broadcasted_iota(jnp.int32, (tq, tk), 0) + qi * tq
                cols = lax.broadcasted_iota(jnp.int32, (tq, tk), 1) + ki * tk
                s = jnp.where((cols <= rows)[None, :, :], s, -1e10)
            m_new = jnp.maximum(m, jnp.max(s, axis=-1, keepdims=True))
            alpha = jnp.exp(m - m_new)
            p = jnp.exp(s - m_new)
            l = alpha * l + jnp.sum(p, axis=-1, keepdims=True)
            acc = alpha * acc + jnp.einsum('hqk,hkd->hqd', p.astype(jnp.bfloat16),
                                           v_t, preferred_element_type=jnp.float32)
            m = m_new
        out_tiles.append(acc / l)                     # exact normalization
    a = jnp.concatenate(out_tiles, axis=1) if n_q > 1 else out_tiles[0]
    return a.transpose(1, 0, 2).reshape(T, D)         # merge_heads


# ------------------------------ fused kernel --------------------------------
# grid = (B, L): axis 0 = batch ("parallel"), axis 1 = layer ("arbitrary").
# The hidden state lives in a VMEM scratch across the layer axis; HBM is
# touched only for the initial embedding read, per-layer weight streams,
# the bf16 KV slabs, and one final residual write after ln_f.

def gpt2_stack_kernel(n_head, n_layer, eps, tq, tk,
                      x_ref,
                      ln1w_ref, ln1b_ref, wqkv_ref, bqkv_ref,
                      wproj_ref, bproj_ref, ln2w_ref, ln2b_ref,
                      wfc_ref, bfc_ref, wfp_ref, bfp_ref,
                      lnfw_ref, lnfb_ref,
                      out_ref, kv_ref,
                      h_ref):
    layer = pl.program_id(1)

    @pl.when(layer == 0)
    def _():
        h_ref[...] = x_ref[0]          # load embeddings once per batch element

    x = h_ref[...]                     # (T, D) f32 residual stream (VMEM-resident)
    T, D = x.shape

    # ----- ln_1 + fused QKV projection -----
    h1 = _layernorm(x, ln1w_ref[0], ln1b_ref[0], eps)
    qkv = _mm(h1, wqkv_ref[0]) + bqkv_ref[0]            # (T, 3D) f32
    q = qkv[:, 0:D]
    k = qkv[:, D:2 * D]
    v = qkv[:, 2 * D:3 * D]

    # Lane-dense bf16 "present" slab (full-D rows, unmasked stores at real D);
    # the torch (2, B, H, T, hd) layout is recovered in the wrapper.
    kv_ref[0, 0, 0] = k.astype(jnp.bfloat16)
    kv_ref[1, 0, 0] = v.astype(jnp.bfloat16)

    # ----- flash-style causal attention (scale=True) + output projection -----
    a = _flash_attn(q, k, v, n_head, tq, tk)
    a = _mm(a, wproj_ref[0]) + bproj_ref[0]
    x2 = x + a

    # ----- ln_2 + MLP -----
    h2 = _layernorm(x2, ln2w_ref[0], ln2b_ref[0], eps)
    hf = _gelu(_mm(h2, wfc_ref[0]) + bfc_ref[0])
    hp = _mm(hf, wfp_ref[0]) + bfp_ref[0]
    h_ref[...] = x2 + hp

    # ----- fused ln_f + single residual write-back on the last layer -----
    @pl.when(layer == n_layer - 1)
    def _():
        out_ref[0] = _layernorm(h_ref[...], lnfw_ref[...], lnfb_ref[...], eps)


# ------------------------------ wrapper --------------------------------------

def _vmem_limit_bytes():
    # Re-derive the VMEM budget per generation (64 MiB v7x vs 128 MiB v5e/v6e),
    # leaving ~25% headroom for compiler scratch.
    try:
        cap = int(pltpu.get_tpu_info().vmem_capacity_bytes)
    except Exception:
        cap = 128 * 1024 * 1024
    return int(min(cap * 3 // 4, 96 * 1024 * 1024))


@functools.partial(jax.jit, static_argnames=("n_layer", "n_head", "eps"))
def gpt2_pallas_forward(input_ids, wte, wpe, stacked, lnf, *, n_layer, n_head, eps):
    B, T = input_ids.shape
    D = wte.shape[1]
    H = n_head
    assert D % H == 0
    hd = D // H

    # Embedding lookups are glue (gather); the hot path is the fused kernel.
    pos = jnp.arange(T, dtype=jnp.int32)
    hidden = (jnp.take(wte, input_ids, axis=0)
              + jnp.take(wpe, pos, axis=0)[None, :, :]).astype(jnp.float32)

    tq = min(T, 128)                   # flash query/key tile (MXU-friendly at real T)
    assert T % tq == 0
    tk = tq

    weights = (stacked['ln1_w'], stacked['ln1_b'],
               stacked['attn_w'], stacked['attn_b'],
               stacked['attn_proj_w'], stacked['attn_proj_b'],
               stacked['ln2_w'], stacked['ln2_b'],
               stacked['fc_w'], stacked['fc_b'],
               stacked['fc_proj_w'], stacked['fc_proj_b'])

    def layer_spec(w):
        # Per-layer weight: block = one layer's slab, indexed by the layer axis.
        nd = w.ndim
        return pl.BlockSpec((1,) + w.shape[1:],
                            lambda b, l, _nd=nd: (l,) + (0,) * (_nd - 1))

    def const_spec(w):
        # Grid-invariant (ln_f) weights: stay VMEM-resident.
        nd = w.ndim
        return pl.BlockSpec(w.shape, lambda b, l, _nd=nd: (0,) * _nd)

    in_specs = ([pl.BlockSpec((1, T, D), lambda b, l: (b, 0, 0))]
                + [layer_spec(w) for w in weights]
                + [const_spec(lnf['w']), const_spec(lnf['b'])])

    out_specs = (
        # Residual output: block index constant across the layer axis -> stays
        # resident in VMEM, written back to HBM once per batch element.
        pl.BlockSpec((1, T, D), lambda b, l: (b, 0, 0)),
        # bf16 KV slab, one (2, T, D) block per (layer, batch).
        pl.BlockSpec((2, 1, 1, T, D), lambda b, l: (0, l, b, 0, 0)),
    )

    # Advisory cost estimate so XLA schedules surrounding ops sensibly.
    flops = int(B * n_layer * (24 * T * D * D + 4 * T * T * D))
    transcendentals = int(B * n_layer * (H * T * T + 4 * T * D))
    w_bytes = sum(int(w.size) * w.dtype.itemsize for w in weights) + 2 * D * 4
    bytes_accessed = int(w_bytes + 2 * B * T * D * 4 + 2 * n_layer * B * T * D * 2)

    kern = functools.partial(gpt2_stack_kernel, n_head, n_layer, eps, tq, tk)
    out, kv = pl.pallas_call(
        kern,
        grid=(B, n_layer),
        out_shape=(jax.ShapeDtypeStruct((B, T, D), jnp.float32),
                   jax.ShapeDtypeStruct((2, n_layer, B, T, D), jnp.bfloat16)),
        in_specs=in_specs,
        out_specs=out_specs,
        scratch_shapes=[pltpu.VMEM((T, D), jnp.float32)],   # residual carry
        input_output_aliases={0: 0},                        # hidden in-place
        compiler_params=pltpu.CompilerParams(
            dimension_semantics=("parallel", "arbitrary"),
            vmem_limit_bytes=_vmem_limit_bytes()),
        cost_estimate=pl.CostEstimate(flops=flops,
                                      transcendentals=transcendentals,
                                      bytes_accessed=bytes_accessed),
    )(hidden, *weights, lnf['w'], lnf['b'])

    # present_l = stack((key.transpose(-2,-1), value)) -> (2, B, H, T, hd).
    # One reshape/transpose over all layers (bf16) recovers the torch layout.
    presents_all = kv.reshape(2, n_layer, B, T, H, hd).transpose(1, 0, 2, 4, 3, 5)
    presents = [presents_all[i] for i in range(n_layer)]
    return out, presents


# --------------------------- parameter init ----------------------------------
# Distinct random weights per layer (stacked with a leading L axis).  The torch
# module deep-copies one block at init, but its forward supports per-layer
# parameters, which this exercises.

def init_params(key, vocab, n_pos, D, L):
    std = 0.02
    f32, bf16 = jnp.float32, jnp.bfloat16
    ks = jax.random.split(key, 6)
    wte = jax.random.normal(ks[0], (vocab, D), f32)    # nn.Embedding default N(0,1)
    wpe = jax.random.normal(ks[1], (n_pos, D), f32)
    stacked = dict(
        ln1_w=jnp.ones((L, 1, D), f32), ln1_b=jnp.zeros((L, 1, D), f32),
        attn_w=(std * jax.random.normal(ks[2], (L, D, 3 * D), f32)).astype(bf16),
        attn_b=jnp.zeros((L, 1, 3 * D), f32),
        attn_proj_w=(std * jax.random.normal(ks[3], (L, D, D), f32)).astype(bf16),
        attn_proj_b=jnp.zeros((L, 1, D), f32),
        ln2_w=jnp.ones((L, 1, D), f32), ln2_b=jnp.zeros((L, 1, D), f32),
        fc_w=(std * jax.random.normal(ks[4], (L, D, 4 * D), f32)).astype(bf16),
        fc_b=jnp.zeros((L, 1, 4 * D), f32),
        fc_proj_w=(std * jax.random.normal(ks[5], (L, 4 * D, D), f32)).astype(bf16),
        fc_proj_b=jnp.zeros((L, 1, D), f32),
    )
    lnf = dict(w=jnp.ones((1, D), f32), b=jnp.zeros((1, D), f32))
    return wte, wpe, stacked, lnf


# --------------------------- pure-JAX reference -------------------------------
# Mirrors the kernel numerics (bf16 matmul operands, f32 accumulation) with a
# plain (non-online) softmax.

def _ref_block(x, p, H, eps):
    B, T, D = x.shape
    hd = D // H
    h1 = _layernorm(x, p['ln1_w'], p['ln1_b'], eps)
    qkv = _mm(h1.reshape(B * T, D), p['attn_w']) + p['attn_b']
    qkv = qkv.reshape(B, T, 3 * D)
    q, k, v = qkv[..., :D], qkv[..., D:2 * D], qkv[..., 2 * D:]
    qh = q.reshape(B, T, H, hd).transpose(0, 2, 1, 3)
    kh = k.reshape(B, T, H, hd).transpose(0, 2, 1, 3)
    vh = v.reshape(B, T, H, hd).transpose(0, 2, 1, 3)
    w = jnp.einsum('bhtd,bhsd->bhts', qh.astype(jnp.bfloat16),
                   kh.astype(jnp.bfloat16),
                   preferred_element_type=jnp.float32) / math.sqrt(hd)
    mask = jnp.tril(jnp.ones((T, T), jnp.float32))
    w = w * mask - 1e10 * (1.0 - mask)
    pw = jax.nn.softmax(w, axis=-1)
    a = jnp.einsum('bhts,bhsd->bhtd', pw.astype(jnp.bfloat16),
                   vh.astype(jnp.bfloat16), preferred_element_type=jnp.float32)
    a = a.transpose(0, 2, 1, 3).reshape(B * T, D)
    a = _mm(a, p['attn_proj_w']) + p['attn_proj_b']
    x2 = x + a.reshape(B, T, D)
    h2 = _layernorm(x2, p['ln2_w'], p['ln2_b'], eps)
    hf = _gelu(_mm(h2.reshape(B * T, D), p['fc_w']) + p['fc_b'])
    hp = _mm(hf, p['fc_proj_w']) + p['fc_proj_b']
    return x2 + hp.reshape(B, T, D), k, v


def ref_forward(input_ids, wte, wpe, stacked, lnf, n_layer, H, eps):
    B, T = input_ids.shape
    D = wte.shape[1]
    hd = D // H
    pos = jnp.arange(T)
    h = jnp.take(wte, input_ids, axis=0) + jnp.take(wpe, pos, axis=0)[None]
    presents = []
    for li in range(n_layer):
        p_l = {name: val[li] for name, val in stacked.items()}
        h, k_l, v_l = _ref_block(h, p_l, H, eps)
        key = k_l.reshape(B, T, H, hd).transpose(0, 2, 1, 3)
        val = v_l.reshape(B, T, H, hd).transpose(0, 2, 1, 3)
        presents.append(jnp.stack([key, val]))
    h = _layernorm(h, lnf['w'], lnf['b'], eps)
    return h, presents


# --------------------------------- main ---------------------------------------

if __name__ == "__main__":
    # Small GPT-2 config consistent with the module's forward.
    B, T = 2, 8               # batch, sequence length
    D, H, L = 32, 4, 2        # n_embd, n_head, n_layer
    VOCAB, N_POS = 50, 16     # vocab_size, n_positions (= n_ctx)
    EPS = 1e-5                # layer_norm_epsilon

    key = jax.random.PRNGKey(0)
    kp, ki = jax.random.split(key)
    wte, wpe, stacked, lnf = init_params(kp, VOCAB, N_POS, D, L)
    input_ids = jax.random.randint(ki, (B, T), 0, VOCAB, dtype=jnp.int32)

    hidden, presents = gpt2_pallas_forward(input_ids, wte, wpe, stacked, lnf,
                                           n_layer=L, n_head=H, eps=EPS)
    hidden = jax.block_until_ready(hidden)
    presents = [jax.block_until_ready(p) for p in presents]

    assert hidden.shape == (B, T, D)
    assert len(presents) == L
    assert presents[0].shape == (2, B, H, T, D // H)

    ref_h, ref_presents = ref_forward(input_ids, wte, wpe, stacked, lnf, L, H, EPS)
    assert jnp.allclose(hidden, ref_h, atol=2e-2, rtol=2e-2), \
        "hidden mismatch vs JAX reference"
    assert jnp.allclose(presents[0].astype(jnp.float32), ref_presents[0],
                        atol=3e-2, rtol=3e-2), "present mismatch vs JAX reference"

    print("KERNEL_OK")
</pallas_src>

<mosaic_0001>
module attributes {stable_mosaic.version = 11 : i64} {
  func.func @gpt2_stack_kernel(%arg0: i32, %arg1: i32, %arg2: memref<1x8x32xf32, #tpu.memory_space<vmem>>, %arg3: memref<1x1x32xf32, #tpu.memory_space<vmem>>, %arg4: memref<1x1x32xf32, #tpu.memory_space<vmem>>, %arg5: memref<1x32x96xbf16, #tpu.memory_space<vmem>>, %arg6: memref<1x1x96xf32, #tpu.memory_space<vmem>>, %arg7: memref<1x32x32xbf16, #tpu.memory_space<vmem>>, %arg8: memref<1x1x32xf32, #tpu.memory_space<vmem>>, %arg9: memref<1x1x32xf32, #tpu.memory_space<vmem>>, %arg10: memref<1x1x32xf32, #tpu.memory_space<vmem>>, %arg11: memref<1x32x128xbf16, #tpu.memory_space<vmem>>, %arg12: memref<1x1x128xf32, #tpu.memory_space<vmem>>, %arg13: memref<1x128x32xbf16, #tpu.memory_space<vmem>>, %arg14: memref<1x1x32xf32, #tpu.memory_space<vmem>>, %arg15: memref<1x32xf32, #tpu.memory_space<vmem>>, %arg16: memref<1x32xf32, #tpu.memory_space<vmem>>, %arg17: memref<1x8x32xf32, #tpu.memory_space<vmem>>, %arg18: memref<2x1x1x8x32xbf16, #tpu.memory_space<vmem>>, %arg19: memref<8x32xf32, #tpu.memory_space<vmem>>) attributes {dimension_semantics = [#tpu.dimension_semantics<parallel>, #tpu.dimension_semantics<arbitrary>], iteration_bounds = array<i64: 2, 2>, scalar_prefetch = 0 : i64, scratch_operands = 1 : i64, tpu.core_type = #tpu.core_type<tc>, window_params = [{transform_indices = @transform_0, window_bounds = array<i64: 1, 8, 32>}, {transform_indices = @transform_1, window_bounds = array<i64: 1, 1, 32>}, {transform_indices = @transform_2, window_bounds = array<i64: 1, 1, 32>}, {transform_indices = @transform_3, window_bounds = array<i64: 1, 32, 96>}, {transform_indices = @transform_4, window_bounds = array<i64: 1, 1, 96>}, {transform_indices = @transform_5, window_bounds = array<i64: 1, 32, 32>}, {transform_indices = @transform_6, window_bounds = array<i64: 1, 1, 32>}, {transform_indices = @transform_7, window_bounds = array<i64: 1, 1, 32>}, {transform_indices = @transform_8, window_bounds = array<i64: 1, 1, 32>}, {transform_indices = @transform_9, window_bounds = array<i64: 1, 32, 128>}, {transform_indices = @transform_10, window_bounds = array<i64: 1, 1, 128>}, {transform_indices = @transform_11, window_bounds = array<i64: 1, 128, 32>}, {transform_indices = @transform_12, window_bounds = array<i64: 1, 1, 32>}, {pipeline_mode = #tpu.pipeline_mode<synchronous>, transform_indices = @transform_13, window_bounds = array<i64: 1, 32>}, {pipeline_mode = #tpu.pipeline_mode<synchronous>, transform_indices = @transform_14, window_bounds = array<i64: 1, 32>}, {transform_indices = @transform_15, window_bounds = array<i64: 1, 8, 32>}, {transform_indices = @transform_16, window_bounds = array<i64: 2, 1, 1, 8, 32>}]} {
    %c0_i32 = arith.constant 0 : i32
    %0 = arith.cmpi eq, %arg1, %c0_i32 : i32
    %1 = arith.extui %0 : i1 to i32
    %c0_i32_0 = arith.constant 0 : i32
    %2 = arith.cmpi ne, %1, %c0_i32_0 : i32
    scf.if %2 {
      %c0_78 = arith.constant 0 : index
      %c0_79 = arith.constant 0 : index
      %c0_80 = arith.constant 0 : index
      %166 = vector.load %arg2[%c0_78, %c0_79, %c0_80] : memref<1x8x32xf32, #tpu.memory_space<vmem>>, vector<1x8x32xf32>
      %167 = vector.shape_cast %166 : vector<1x8x32xf32> to vector<8x32xf32>
      %c0_81 = arith.constant 0 : index
      %c0_82 = arith.constant 0 : index
      %168 = vector.load %arg19[%c0_81, %c0_82] : memref<8x32xf32, #tpu.memory_space<vmem>>, vector<8x32xf32>
      tpu.vector_store %arg19[%c0_81, %c0_82], %167 {strides = array<i32>} : memref<8x32xf32, #tpu.memory_space<vmem>>, vector<8x32xf32>,
    } else {
    }
    %c0 = arith.constant 0 : index
    %c0_1 = arith.constant 0 : index
    %3 = vector.load %arg19[%c0, %c0_1] : memref<8x32xf32, #tpu.memory_space<vmem>>, vector<8x32xf32>
    %c0_2 = arith.constant 0 : index
    %c0_3 = arith.constant 0 : index
    %c0_4 = arith.constant 0 : index
    %4 = vector.load %arg3[%c0_2, %c0_3, %c0_4] : memref<1x1x32xf32, #tpu.memory_space<vmem>>, vector<1x1x32xf32>
    %5 = vector.shape_cast %4 : vector<1x1x32xf32> to vector<1x32xf32>
    %c0_5 = arith.constant 0 : index
    %c0_6 = arith.constant 0 : index
    %c0_7 = arith.constant 0 : index
    %6 = vector.load %arg4[%c0_5, %c0_6, %c0_7] : memref<1x1x32xf32, #tpu.memory_space<vmem>>, vector<1x1x32xf32>
    %7 = vector.shape_cast %6 : vector<1x1x32xf32> to vector<1x32xf32>
    %cst = arith.constant dense<0.000000e+00> : vector<8xf32>
    %8 = vector.multi_reduction <add>, %3, %cst [1] : vector<8x32xf32> to vector<8xf32>
    %9 = vector.shape_cast %8 : vector<8xf32> to vector<8x1xf32>
    %cst_8 = arith.constant 3.200000e+01 : f32
    %10 = vector.broadcast %cst_8 : f32 to vector<8x1xf32>
    %11 = arith.divf %9, %10 : vector<8x1xf32>
    %12 = vector.broadcast %11 : vector<8x1xf32> to vector<8x32xf32>
    %13 = arith.subf %3, %12 : vector<8x32xf32>
    %14 = arith.mulf %13, %13 : vector<8x32xf32>
    %cst_9 = arith.constant dense<0.000000e+00> : vector<8xf32>
    %15 = vector.multi_reduction <add>, %14, %cst_9 [1] : vector<8x32xf32> to vector<8xf32>
    %16 = vector.shape_cast %15 : vector<8xf32> to vector<8x1xf32>
    %cst_10 = arith.constant 3.200000e+01 : f32
    %17 = vector.broadcast %cst_10 : f32 to vector<8x1xf32>
    %18 = arith.divf %16, %17 : vector<8x1xf32>
    %19 = vector.broadcast %11 : vector<8x1xf32> to vector<8x32xf32>
    %20 = arith.subf %3, %19 : vector<8x32xf32>
    %cst_11 = arith.constant 9.99999974E-6 : f32
    %21 = vector.broadcast %cst_11 : f32 to vector<8x1xf32>
    %22 = arith.addf %18, %21 : vector<8x1xf32>
    %23 = math.sqrt %22 : vector<8x1xf32>
    %24 = vector.broadcast %23 : vector<8x1xf32> to vector<8x32xf32>
    %25 = arith.divf %20, %24 : vector<8x32xf32>
    %26 = vector.broadcast %5 : vector<1x32xf32> to vector<8x32xf32>
    %27 = arith.mulf %26, %25 : vector<8x32xf32>
    %28 = vector.broadcast %7 : vector<1x32xf32> to vector<8x32xf32>
    %29 = arith.addf %27, %28 : vector<8x32xf32>
    %c0_12 = arith.constant 0 : index
    %c0_13 = arith.constant 0 : index
    %c0_14 = arith.constant 0 : index
    %30 = vector.load %arg5[%c0_12, %c0_13, %c0_14] : memref<1x32x96xbf16, #tpu.memory_space<vmem>>, vector<1x32x96xbf16>
    %31 = vector.shape_cast %30 : vector<1x32x96xbf16> to vector<32x96xbf16>
    %32 = arith.truncf %29 : vector<8x32xf32> to vector<8x32xbf16>
    %cst_15 = arith.constant dense<0.000000e+00> : vector<8x96xf32>
    %33 = tpu.matmul %32, %31, %cst_15 {dimension_numbers = #tpu.dot_dimension_numbers<[1], [0], [0], [1], [0, 0, 1, 1], [], []>} : vector<8x32xbf16>, vector<32x96xbf16>, vector<8x96xf32> -> vector<8x96xf32>
    %c0_16 = arith.constant 0 : index
    %c0_17 = arith.constant 0 : index
    %c0_18 = arith.constant 0 : index
    %34 = vector.load %arg6[%c0_16, %c0_17, %c0_18] : memref<1x1x96xf32, #tpu.memory_space<vmem>>, vector<1x1x96xf32>
    %35 = vector.shape_cast %34 : vector<1x1x96xf32> to vector<1x96xf32>
    %36 = vector.broadcast %35 : vector<1x96xf32> to vector<8x96xf32>
    %37 = arith.addf %33, %36 : vector<8x96xf32>
    %38 = vector.extract_strided_slice %37 {offsets = [0, 0], sizes = [8, 32], strides = [1, 1]} : vector<8x96xf32> to vector<8x32xf32>
    %39 = vector.extract_strided_slice %37 {offsets = [0, 32], sizes = [8, 32], strides = [1, 1]} : vector<8x96xf32> to vector<8x32xf32>
    %40 = vector.extract_strided_slice %37 {offsets = [0, 64], sizes = [8, 32], strides = [1, 1]} : vector<8x96xf32> to vector<8x32xf32>
    %41 = arith.truncf %39 : vector<8x32xf32> to vector<8x32xbf16>
    %c0_19 = arith.constant 0 : index
    %c0_20 = arith.constant 0 : index
    %c0_21 = arith.constant 0 : index
    %c0_22 = arith.constant 0 : index
    %c0_23 = arith.constant 0 : index
    %42 = vector.load %arg18[%c0_19, %c0_20, %c0_21, %c0_22, %c0_23] : memref<2x1x1x8x32xbf16, #tpu.memory_space<vmem>>, vector<1x1x1x8x32xbf16>
    %43 = vector.shape_cast %42 : vector<1x1x1x8x32xbf16> to vector<8x32xbf16>
    %44 = vector.shape_cast %41 : vector<8x32xbf16> to vector<1x1x1x8x32xbf16>
    tpu.vector_store %arg18[%c0_19, %c0_20, %c0_21, %c0_22, %c0_23], %44 {strides = array<i32>} : memref<2x1x1x8x32xbf16, #tpu.memory_space<vmem>>, vector<1x1x1x8x32xbf16>,
    %45 = arith.truncf %40 : vector<8x32xf32> to vector<8x32xbf16>
    %c1 = arith.constant 1 : index
    %c0_24 = arith.constant 0 : index
    %c0_25 = arith.constant 0 : index
    %c0_26 = arith.constant 0 : index
    %c0_27 = arith.constant 0 : index
    %46 = vector.load %arg18[%c1, %c0_24, %c0_25, %c0_26, %c0_27] : memref<2x1x1x8x32xbf16, #tpu.memory_space<vmem>>, vector<1x1x1x8x32xbf16>
    %47 = vector.shape_cast %46 : vector<1x1x1x8x32xbf16> to vector<8x32xbf16>
    %48 = vector.shape_cast %45 : vector<8x32xbf16> to vector<1x1x1x8x32xbf16>
    tpu.vector_store %arg18[%c1, %c0_24, %c0_25, %c0_26, %c0_27], %48 {strides = array<i32>} : memref<2x1x1x8x32xbf16, #tpu.memory_space<vmem>>, vector<1x1x1x8x32xbf16>,
    %49 = vector.shape_cast %39 : vector<8x32xf32> to vector<8x4x8xf32>
    %50 = tpu.transpose %49, [1, 0, 2] : vector<8x4x8xf32> -> vector<4x8x8xf32>
    %51 = arith.truncf %50 : vector<4x8x8xf32> to vector<4x8x8xbf16>
    %52 = vector.shape_cast %40 : vector<8x32xf32> to vector<8x4x8xf32>
    %53 = tpu.transpose %52, [1, 0, 2] : vector<8x4x8xf32> -> vector<4x8x8xf32>
    %54 = arith.truncf %53 : vector<4x8x8xf32> to vector<4x8x8xbf16>
    %55 = vector.shape_cast %38 : vector<8x32xf32> to vector<8x4x8xf32>
    %56 = tpu.transpose %55, [1, 0, 2] : vector<8x4x8xf32> -> vector<4x8x8xf32>
    %57 = arith.truncf %56 : vector<4x8x8xf32> to vector<4x8x8xbf16>
    %cst_28 = arith.constant -1.000000e+30 : f32
    %58 = vector.broadcast %cst_28 : f32 to vector<4x8x1xf32>
    %cst_29 = arith.constant 0.000000e+00 : f32
    %59 = vector.broadcast %cst_29 : f32 to vector<4x8x1xf32>
    %cst_30 = arith.constant 0.000000e+00 : f32
    %60 = vector.broadcast %cst_30 : f32 to vector<4x8x8xf32>
    "tpu.trace_start"() <{level = 10 : i32, message = "hqd,hkd->hqk"}> : () -> ()
    %cst_31 = arith.constant dense<0.000000e+00> : vector<4x8x8xf32>
    %61 = tpu.matmul %57, %51, %cst_31 {dimension_numbers = #tpu.dot_dimension_numbers<[2], [2], [1], [1], [0, 0, 0, 1, 1, 1], [0], [0]>} : vector<4x8x8xbf16>, vector<4x8x8xbf16>, vector<4x8x8xf32> -> vector<4x8x8xf32>
    "tpu.trace_stop"() : () -> ()
    %cst_32 = arith.constant 0.353553385 : f32
    %62 = vector.broadcast %cst_32 : f32 to vector<4x8x8xf32>
    %63 = arith.mulf %61, %62 : vector<4x8x8xf32>
    %64 = tpu.iota {dimensions = array<i32: 0>} : vector<8x8xi32>
    %c0_i32_33 = arith.constant 0 : i32
    %65 = vector.broadcast %c0_i32_33 : i32 to vector<8x8xi32>
    %66 = arith.addi %64, %65 : vector<8x8xi32>
    %67 = tpu.iota {dimensions = array<i32: 1>} : vector<8x8xi32>
    %c0_i32_34 = arith.constant 0 : i32
    %68 = vector.broadcast %c0_i32_34 : i32 to vector<8x8xi32>
    %69 = arith.addi %67, %68 : vector<8x8xi32>
    %70 = arith.cmpi sle, %69, %66 : vector<8x8xi32>
    %71 = vector.shape_cast %70 : vector<8x8xi1> to vector<1x8x8xi1>
    %cst_35 = arith.constant -1.000000e+10 : f32
    %72 = vector.shape_cast %71 : vector<1x8x8xi1> to vector<1x8x8xi1>
    %73 = vector.broadcast %72 : vector<1x8x8xi1> to vector<4x8x8xi1>
    %74 = vector.broadcast %cst_35 : f32 to vector<4x8x8xf32>
    %75 = arith.select %73, %63, %74 : vector<4x8x8xi1>, vector<4x8x8xf32>
    %cst_36 = arith.constant dense<0xFF800000> : vector<4x8xf32>
    %76 = vector.multi_reduction <maximumf>, %75, %cst_36 [2] : vector<4x8x8xf32> to vector<4x8xf32>
    %77 = vector.shape_cast %76 : vector<4x8xf32> to vector<4x8x1xf32>
    %78 = arith.maximumf %58, %77 : vector<4x8x1xf32>
    %79 = arith.subf %58, %78 : vector<4x8x1xf32>
    %80 = math.exp %79 : vector<4x8x1xf32>
    %81 = vector.broadcast %78 : vector<4x8x1xf32> to vector<4x8x8xf32>
    %82 = arith.subf %75, %81 : vector<4x8x8xf32>
    %83 = math.exp %82 : vector<4x8x8xf32>
    %84 = arith.mulf %80, %59 : vector<4x8x1xf32>
    %cst_37 = arith.constant dense<0.000000e+00> : vector<4x8xf32>
    %85 = vector.multi_reduction <add>, %83, %cst_37 [2] : vector<4x8x8xf32> to vector<4x8xf32>
    %86 = vector.shape_cast %85 : vector<4x8xf32> to vector<4x8x1xf32>
    %87 = arith.addf %84, %86 : vector<4x8x1xf32>
    %88 = vector.broadcast %80 : vector<4x8x1xf32> to vector<4x8x8xf32>
    %89 = arith.mulf %88, %60 : vector<4x8x8xf32>
    %90 = arith.truncf %83 : vector<4x8x8xf32> to vector<4x8x8xbf16>
    "tpu.trace_start"() <{level = 10 : i32, message = "hqk,hkd->hqd"}> : () -> ()
    %cst_38 = arith.constant dense<0.000000e+00> : vector<4x8x8xf32>
    %91 = tpu.matmul %90, %54, %cst_38 {dimension_numbers = #tpu.dot_dimension_numbers<[2], [1], [1], [2], [0, 0, 0, 1, 1, 2], [0], [0]>} : vector<4x8x8xbf16>, vector<4x8x8xbf16>, vector<4x8x8xf32> -> vector<4x8x8xf32>
    "tpu.trace_stop"() : () -> ()
    %92 = arith.addf %89, %91 : vector<4x8x8xf32>
    %93 = vector.broadcast %87 : vector<4x8x1xf32> to vector<4x8x8xf32>
    %94 = arith.divf %92, %93 : vector<4x8x8xf32>
    %95 = tpu.transpose %94, [1, 0, 2] : vector<4x8x8xf32> -> vector<8x4x8xf32>
    %96 = vector.shape_cast %95 : vector<8x4x8xf32> to vector<8x32xf32>
    %c0_39 = arith.constant 0 : index
    %c0_40 = arith.constant 0 : index
    %c0_41 = arith.constant 0 : index
    %97 = vector.load %arg7[%c0_39, %c0_40, %c0_41] : memref<1x32x32xbf16, #tpu.memory_space<vmem>>, vector<1x32x32xbf16>
    %98 = vector.shape_cast %97 : vector<1x32x32xbf16> to vector<32x32xbf16>
    %99 = arith.truncf %96 : vector<8x32xf32> to vector<8x32xbf16>
    %cst_42 = arith.constant dense<0.000000e+00> : vector<8x32xf32>
    %100 = tpu.matmul %99, %98, %cst_42 {dimension_numbers = #tpu.dot_dimension_numbers<[1], [0], [0], [1], [0, 0, 1, 1], [], []>} : vector<8x32xbf16>, vector<32x32xbf16>, vector<8x32xf32> -> vector<8x32xf32>
    %c0_43 = arith.constant 0 : index
    %c0_44 = arith.constant 0 : index
    %c0_45 = arith.constant 0 : index
    %101 = vector.load %arg8[%c0_43, %c0_44, %c0_45] : memref<1x1x32xf32, #tpu.memory_space<vmem>>, vector<1x1x32xf32>
    %102 = vector.shape_cast %101 : vector<1x1x32xf32> to vector<1x32xf32>
    %103 = vector.broadcast %102 : vector<1x32xf32> to vector<8x32xf32>
    %104 = arith.addf %100, %103 : vector<8x32xf32>
    %105 = arith.addf %3, %104 : vector<8x32xf32>
    %c0_46 = arith.constant 0 : index
    %c0_47 = arith.constant 0 : index
    %c0_48 = arith.constant 0 : index
    %106 = vector.load %arg9[%c0_46, %c0_47, %c0_48] : memref<1x1x32xf32, #tpu.memory_space<vmem>>, vector<1x1x32xf32>
    %107 = vector.shape_cast %106 : vector<1x1x32xf32> to vector<1x32xf32>
    %c0_49 = arith.constant 0 : index
    %c0_50 = arith.constant 0 : index
    %c0_51 = arith.constant 0 : index
    %108 = vector.load %arg10[%c0_49, %c0_50, %c0_51] : memref<1x1x32xf32, #tpu.memory_space<vmem>>, vector<1x1x32xf32>
    %109 = vector.shape_cast %108 : vector<1x1x32xf32> to vector<1x32xf32>
    %cst_52 = arith.constant dense<0.000000e+00> : vector<8xf32>
    %110 = vector.multi_reduction <add>, %105, %cst_52 [1] : vector<8x32xf32> to vector<8xf32>
    %111 = vector.shape_cast %110 : vector<8xf32> to vector<8x1xf32>
    %cst_53 = arith.constant 3.200000e+01 : f32
    %112 = vector.broadcast %cst_53 : f32 to vector<8x1xf32>
    %113 = arith.divf %111, %112 : vector<8x1xf32>
    %114 = vector.broadcast %113 : vector<8x1xf32> to vector<8x32xf32>
    %115 = arith.subf %105, %114 : vector<8x32xf32>
    %116 = arith.mulf %115, %115 : vector<8x32xf32>
    %cst_54 = arith.constant dense<0.000000e+00> : vector<8xf32>
    %117 = vector.multi_reduction <add>, %116, %cst_54 [1] : vector<8x32xf32> to vector<8xf32>
    %118 = vector.shape_cast %117 : vector<8xf32> to vector<8x1xf32>
    %cst_55 = arith.constant 3.200000e+01 : f32
    %119 = vector.broadcast %cst_55 : f32 to vector<8x1xf32>
    %120 = arith.divf %118, %119 : vector<8x1xf32>
    %121 = vector.broadcast %113 : vector<8x1xf32> to vector<8x32xf32>
    %122 = arith.subf %105, %121 : vector<8x32xf32>
    %cst_56 = arith.constant 9.99999974E-6 : f32
    %123 = vector.broadcast %cst_56 : f32 to vector<8x1xf32>
    %124 = arith.addf %120, %123 : vector<8x1xf32>
    %125 = math.sqrt %124 : vector<8x1xf32>
    %126 = vector.broadcast %125 : vector<8x1xf32> to vector<8x32xf32>
    %127 = arith.divf %122, %126 : vector<8x32xf32>
    %128 = vector.broadcast %107 : vector<1x32xf32> to vector<8x32xf32>
    %129 = arith.mulf %128, %127 : vector<8x32xf32>
    %130 = vector.broadcast %109 : vector<1x32xf32> to vector<8x32xf32>
    %131 = arith.addf %129, %130 : vector<8x32xf32>
    %c0_57 = arith.constant 0 : index
    %c0_58 = arith.constant 0 : index
    %c0_59 = arith.constant 0 : index
    %132 = vector.load %arg11[%c0_57, %c0_58, %c0_59] : memref<1x32x128xbf16, #tpu.memory_space<vmem>>, vector<1x32x128xbf16>
    %133 = vector.shape_cast %132 : vector<1x32x128xbf16> to vector<32x128xbf16>
    %134 = arith.truncf %131 : vector<8x32xf32> to vector<8x32xbf16>
    %cst_60 = arith.constant dense<0.000000e+00> : vector<8x128xf32>
    %135 = tpu.matmul %134, %133, %cst_60 {dimension_numbers = #tpu.dot_dimension_numbers<[1], [0], [0], [1], [0, 0, 1, 1], [], []>} : vector<8x32xbf16>, vector<32x128xbf16>, vector<8x128xf32> -> vector<8x128xf32>
    %c0_61 = arith.constant 0 : index
    %c0_62 = arith.constant 0 : index
    %c0_63 = arith.constant 0 : index
    %136 = vector.load %arg12[%c0_61, %c0_62, %c0_63] : memref<1x1x128xf32, #tpu.memory_space<vmem>>, vector<1x1x128xf32>
    %137 = vector.shape_cast %136 : vector<1x1x128xf32> to vector<1x128xf32>
    %138 = vector.broadcast %137 : vector<1x128xf32> to vector<8x128xf32>
    %139 = arith.addf %135, %138 : vector<8x128xf32>
    %cst_64 = arith.constant 5.000000e-01 : f32
    %140 = vector.broadcast %cst_64 : f32 to vector<8x128xf32>
    %141 = arith.mulf %140, %139 : vector<8x128xf32>
    %142 = arith.mulf %139, %139 : vector<8x128xf32>
    %143 = arith.mulf %139, %142 : vector<8x128xf32>
    %cst_65 = arith.constant 4.471500e-02 : f32
    %144 = vector.broadcast %cst_65 : f32 to vector<8x128xf32>
    %145 = arith.mulf %144, %143 : vector<8x128xf32>
    %146 = arith.addf %139, %145 : vector<8x128xf32>
    %cst_66 = arith.constant 0.797884583 : f32
    %147 = vector.broadcast %cst_66 : f32 to vector<8x128xf32>
    %148 = arith.mulf %147, %146 : vector<8x128xf32>
    %149 = math.tanh %148 : vector<8x128xf32>
    %cst_67 = arith.constant 1.000000e+00 : f32
    %150 = vector.broadcast %cst_67 : f32 to vector<8x128xf32>
    %151 = arith.addf %150, %149 : vector<8x128xf32>
    %152 = arith.mulf %141, %151 : vector<8x128xf32>
    %c0_68 = arith.constant 0 : index
    %c0_69 = arith.constant 0 : index
    %c0_70 = arith.constant 0 : index
    %153 = vector.load %arg13[%c0_68, %c0_69, %c0_70] : memref<1x128x32xbf16, #tpu.memory_space<vmem>>, vector<1x128x32xbf16>
    %154 = vector.shape_cast %153 : vector<1x128x32xbf16> to vector<128x32xbf16>
    %155 = arith.truncf %152 : vector<8x128xf32> to vector<8x128xbf16>
    %cst_71 = arith.constant dense<0.000000e+00> : vector<8x32xf32>
    %156 = tpu.matmul %155, %154, %cst_71 {dimension_numbers = #tpu.dot_dimension_numbers<[1], [0], [0], [1], [0, 0, 1, 1], [], []>} : vector<8x128xbf16>, vector<128x32xbf16>, vector<8x32xf32> -> vector<8x32xf32>
    %c0_72 = arith.constant 0 : index
    %c0_73 = arith.constant 0 : index
    %c0_74 = arith.constant 0 : index
    %157 = vector.load %arg14[%c0_72, %c0_73, %c0_74] : memref<1x1x32xf32, #tpu.memory_space<vmem>>, vector<1x1x32xf32>
    %158 = vector.shape_cast %157 : vector<1x1x32xf32> to vector<1x32xf32>
    %159 = vector.broadcast %158 : vector<1x32xf32> to vector<8x32xf32>
    %160 = arith.addf %156, %159 : vector<8x32xf32>
    %161 = arith.addf %105, %160 : vector<8x32xf32>
    %c0_75 = arith.constant 0 : index
    %c0_76 = arith.constant 0 : index
    %162 = vector.load %arg19[%c0_75, %c0_76] : memref<8x32xf32, #tpu.memory_space<vmem>>, vector<8x32xf32>
    tpu.vector_store %arg19[%c0_75, %c0_76], %161 {strides = array<i32>} : memref<8x32xf32, #tpu.memory_space<vmem>>, vector<8x32xf32>,
    %c1_i32 = arith.constant 1 : i32
    %163 = arith.cmpi eq, %arg1, %c1_i32 : i32
    %164 = arith.extui %163 : i1 to i32
    %c0_i32_77 = arith.constant 0 : i32
    %165 = arith.cmpi ne, %164, %c0_i32_77 : i32
    scf.if %165 {
      %c0_78 = arith.constant 0 : index
      %c0_79 = arith.constant 0 : index
      %166 = vector.load %arg19[%c0_78, %c0_79] : memref<8x32xf32, #tpu.memory_space<vmem>>, vector<8x32xf32>
      %c0_80 = arith.constant 0 : index
      %c0_81 = arith.constant 0 : index
      %167 = vector.load %arg15[%c0_80, %c0_81] : memref<1x32xf32, #tpu.memory_space<vmem>>, vector<1x32xf32>
      %c0_82 = arith.constant 0 : index
      %c0_83 = arith.constant 0 : index
      %168 = vector.load %arg16[%c0_82, %c0_83] : memref<1x32xf32, #tpu.memory_space<vmem>>, vector<1x32xf32>
      %cst_84 = arith.constant dense<0.000000e+00> : vector<8xf32>
      %169 = vector.multi_reduction <add>, %166, %cst_84 [1] : vector<8x32xf32> to vector<8xf32>
      %170 = vector.shape_cast %169 : vector<8xf32> to vector<8x1xf32>
      %cst_85 = arith.constant 3.200000e+01 : f32
      %171 = vector.broadcast %cst_85 : f32 to vector<8x1xf32>
      %172 = arith.divf %170, %171 : vector<8x1xf32>
      %173 = vector.broadcast %172 : vector<8x1xf32> to vector<8x32xf32>
      %174 = arith.subf %166, %173 : vector<8x32xf32>
      %175 = arith.mulf %174, %174 : vector<8x32xf32>
      %cst_86 = arith.constant dense<0.000000e+00> : vector<8xf32>
      %176 = vector.multi_reduction <add>, %175, %cst_86 [1] : vector<8x32xf32> to vector<8xf32>
      %177 = vector.shape_cast %176 : vector<8xf32> to vector<8x1xf32>
      %cst_87 = arith.constant 3.200000e+01 : f32
      %178 = vector.broadcast %cst_87 : f32 to vector<8x1xf32>
      %179 = arith.divf %177, %178 : vector<8x1xf32>
      %180 = vector.broadcast %172 : vector<8x1xf32> to vector<8x32xf32>
      %181 = arith.subf %166, %180 : vector<8x32xf32>
      %cst_88 = arith.constant 9.99999974E-6 : f32
      %182 = vector.broadcast %cst_88 : f32 to vector<8x1xf32>
      %183 = arith.addf %179, %182 : vector<8x1xf32>
      %184 = math.sqrt %183 : vector<8x1xf32>
      %185 = vector.broadcast %184 : vector<8x1xf32> to vector<8x32xf32>
      %186 = arith.divf %181, %185 : vector<8x32xf32>
      %187 = vector.broadcast %167 : vector<1x32xf32> to vector<8x32xf32>
      %188 = arith.mulf %187, %186 : vector<8x32xf32>
      %189 = vector.broadcast %168 : vector<1x32xf32> to vector<8x32xf32>
      %190 = arith.addf %188, %189 : vector<8x32xf32>
      %c0_89 = arith.constant 0 : index
      %c0_90 = arith.constant 0 : index
      %c0_91 = arith.constant 0 : index
      %191 = vector.load %arg17[%c0_89, %c0_90, %c0_91] : memref<1x8x32xf32, #tpu.memory_space<vmem>>, vector<1x8x32xf32>
      %192 = vector.shape_cast %191 : vector<1x8x32xf32> to vector<8x32xf32>
      %193 = vector.shape_cast %190 : vector<8x32xf32> to vector<1x8x32xf32>
      tpu.vector_store %arg17[%c0_89, %c0_90, %c0_91], %193 {strides = array<i32>} : memref<1x8x32xf32, #tpu.memory_space<vmem>>, vector<1x8x32xf32>,
    } else {
    }
    return
  }
  func.func @transform_0(%arg0: i32, %arg1: i32) -> (i32, i32, i32) {
    %c0_i32 = arith.constant 0 : i32
    %c0_i32_0 = arith.constant 0 : i32
    %c0_i32_1 = arith.constant 0 : i32
    return %arg0, %c0_i32, %c0_i32_0 : i32, i32, i32
  }
  func.func @transform_1(%arg0: i32, %arg1: i32) -> (i32, i32, i32) {
    %c0_i32 = arith.constant 0 : i32
    %c0_i32_0 = arith.constant 0 : i32
    %c0_i32_1 = arith.constant 0 : i32
    return %arg1, %c0_i32, %c0_i32_0 : i32, i32, i32
  }
  func.func @transform_2(%arg0: i32, %arg1: i32) -> (i32, i32, i32) {
    %c0_i32 = arith.constant 0 : i32
    %c0_i32_0 = arith.constant 0 : i32
    %c0_i32_1 = arith.constant 0 : i32
    return %arg1, %c0_i32, %c0_i32_0 : i32, i32, i32
  }
  func.func @transform_3(%arg0: i32, %arg1: i32) -> (i32, i32, i32) {
    %c0_i32 = arith.constant 0 : i32
    %c0_i32_0 = arith.constant 0 : i32
    %c0_i32_1 = arith.constant 0 : i32
    return %arg1, %c0_i32, %c0_i32_0 : i32, i32, i32
  }
  func.func @transform_4(%arg0: i32, %arg1: i32) -> (i32, i32, i32) {
    %c0_i32 = arith.constant 0 : i32
    %c0_i32_0 = arith.constant 0 : i32
    %c0_i32_1 = arith.constant 0 : i32
    return %arg1, %c0_i32, %c0_i32_0 : i32, i32, i32
  }
  func.func @transform_5(%arg0: i32, %arg1: i32) -> (i32, i32, i32) {
    %c0_i32 = arith.constant 0 : i32
    %c0_i32_0 = arith.constant 0 : i32
    %c0_i32_1 = arith.constant 0 : i32
    return %arg1, %c0_i32, %c0_i32_0 : i32, i32, i32
  }
  func.func @transform_6(%arg0: i32, %arg1: i32) -> (i32, i32, i32) {
    %c0_i32 = arith.constant 0 : i32
    %c0_i32_0 = arith.constant 0 : i32
    %c0_i32_1 = arith.constant 0 : i32
    return %arg1, %c0_i32, %c0_i32_0 : i32, i32, i32
  }
  func.func @transform_7(%arg0: i32, %arg1: i32) -> (i32, i32, i32) {
    %c0_i32 = arith.constant 0 : i32
    %c0_i32_0 = arith.constant 0 : i32
    %c0_i32_1 = arith.constant 0 : i32
    return %arg1, %c0_i32, %c0_i32_0 : i32, i32, i32
  }
  func.func @transform_8(%arg0: i32, %arg1: i32) -> (i32, i32, i32) {
    %c0_i32 = arith.constant 0 : i32
    %c0_i32_0 = arith.constant 0 : i32
    %c0_i32_1 = arith.constant 0 : i32
    return %arg1, %c0_i32, %c0_i32_0 : i32, i32, i32
  }
  func.func @transform_9(%arg0: i32, %arg1: i32) -> (i32, i32, i32) {
    %c0_i32 = arith.constant 0 : i32
    %c0_i32_0 = arith.constant 0 : i32
    %c0_i32_1 = arith.constant 0 : i32
    return %arg1, %c0_i32, %c0_i32_0 : i32, i32, i32
  }
  func.func @transform_10(%arg0: i32, %arg1: i32) -> (i32, i32, i32) {
    %c0_i32 = arith.constant 0 : i32
    %c0_i32_0 = arith.constant 0 : i32
    %c0_i32_1 = arith.constant 0 : i32
    return %arg1, %c0_i32, %c0_i32_0 : i32, i32, i32
  }
  func.func @transform_11(%arg0: i32, %arg1: i32) -> (i32, i32, i32) {
    %c0_i32 = arith.constant 0 : i32
    %c0_i32_0 = arith.constant 0 : i32
    %c0_i32_1 = arith.constant 0 : i32
    return %arg1, %c0_i32, %c0_i32_0 : i32, i32, i32
  }
  func.func @transform_12(%arg0: i32, %arg1: i32) -> (i32, i32, i32) {
    %c0_i32 = arith.constant 0 : i32
    %c0_i32_0 = arith.constant 0 : i32
    %c0_i32_1 = arith.constant 0 : i32
    return %arg1, %c0_i32, %c0_i32_0 : i32, i32, i32
  }
  func.func @transform_13(%arg0: i32, %arg1: i32) -> (i32, i32) {
    %c0_i32 = arith.constant 0 : i32
    %c0_i32_0 = arith.constant 0 : i32
    %c0_i32_1 = arith.constant 0 : i32
    return %c0_i32, %c0_i32_0 : i32, i32
  }
  func.func @transform_14(%arg0: i32, %arg1: i32) -> (i32, i32) {
    %c0_i32 = arith.constant 0 : i32
    %c0_i32_0 = arith.constant 0 : i32
    %c0_i32_1 = arith.constant 0 : i32
    return %c0_i32, %c0_i32_0 : i32, i32
  }
  func.func @transform_15(%arg0: i32, %arg1: i32) -> (i32, i32, i32) {
    %c0_i32 = arith.constant 0 : i32
    %c0_i32_0 = arith.constant 0 : i32
    %c0_i32_1 = arith.constant 0 : i32
    return %arg0, %c0_i32, %c0_i32_0 : i32, i32, i32
  }
  func.func @transform_16(%arg0: i32, %arg1: i32) -> (i32, i32, i32, i32, i32) {
    %c0_i32 = arith.constant 0 : i32
    %c0_i32_0 = arith.constant 0 : i32
    %c0_i32_1 = arith.constant 0 : i32
    %c0_i32_2 = arith.constant 0 : i32
    return %c0_i32, %arg1, %arg0, %c0_i32_0, %c0_i32_1 : i32, i32, i32, i32, i32
  }
}

</mosaic_0001>

<bundles_post_ra>
// kernel: gpt2_pallas_forward.1
= control target key start
LH: loop header
LB: loop body
LE: loop exit
PB: predicated region body
PF: predicated region fallthrough
CT: control target
= control target key end

     0   :  { %s3479_s0 = inlined_call_operand.vmem [shape: f32[2,8,32], index: 0, kind: input, shape index: {}, may-alias: {0,15}]   ;;  %s3480_s1 = inlined_call_operand.vmem [shape: f32[2,1,32], index: 1, kind: input, shape index: {}]   ;;  %s3481_s2 = inlined_call_operand.vmem [shape: f32[2,1,32], index: 2, kind: input, shape index: {}]   ;;  %s3482_s3 = inlined_call_operand.vmem [shape: bf16[2,32,96], index: 3, kind: input, shape index: {}]   ;;  %s3483_s4 = inlined_call_operand.vmem [shape: f32[2,1,96], index: 4, kind: input, shape index: {}]   ;;  %s3484_s5 = inlined_call_operand.vmem [shape: bf16[2,32,32], index: 5, kind: input, shape index: {}]   ;;  %s3485_s6 = inlined_call_operand.vmem [shape: f32[2,1,32], index: 6, kind: input, shape index: {}]   ;;  %s3486_s7 = inlined_call_operand.vmem [shape: f32[2,1,32], index: 7, kind: input, shape index: {}]   ;;  %s3487_s8 = inlined_call_operand.vmem [shape: f32[2,1,32], index: 8, kind: input, shape index: {}]   ;;  %s3488_s9 = inlined_call_operand.vmem [shape: bf16[2,32,128], index: 9, kind: input, shape index: {}]   ;;  %s3489_s10 = inlined_call_operand.vmem [shape: f32[2,1,128], index: 10, kind: input, shape index: {}]   ;;  %s3490_s11 = inlined_call_operand.vmem [shape: bf16[2,128,32], index: 11, kind: input, shape index: {}]   ;;  %s3491_s12 = inlined_call_operand.vmem [shape: f32[2,1,32], index: 12, kind: input, shape index: {}]   ;;  %s3492_s13 = inlined_call_operand.vmem [shape: f32[1,32], index: 13, kind: input, shape index: {}]   ;;  %s3493_s14 = inlined_call_operand.vmem [shape: f32[1,32], index: 14, kind: input, shape index: {}]   ;;  %s3494_s15 = inlined_call_operand.vmem [shape: f32[2,8,32], index: 15, kind: output, shape index: {0}, may-alias: {0,15}]   ;;  %s3495_s16 = inlined_call_operand.vmem [shape: bf16[2,2,2,8,32], index: 16, kind: output, shape index: {1}]  }
   0x1   :  { %3505 = sst [smem:[#allocation14_spill]] %s3479_s0 }
   0x2   :  { %3506 = sst [smem:[#allocation15_spill]] %s3481_s2 }
   0x3   :  { %3507 = sst [smem:[#allocation16_spill]] %s3482_s3 }
   0x4   :  { %3508 = sst [smem:[#allocation17_spill]] %s3484_s5 }
   0x5   :  { %3509 = sst [smem:[#allocation18_spill]] %s3486_s7 }
   0x6   :  { %3510 = sst [smem:[#allocation19_spill]] %s3490_s11 }
   0x7   :  { %3511 = sst [smem:[#allocation20_spill]] %s3492_s13 }
   0x8   :  { %3512 = sst [smem:[#allocation21_spill]] %s3493_s14 }
   0x9   :  { %3513 = sst [smem:[#allocation22_spill]] %s3494_s15 }
   0xa   :  { %3514 = sst [smem:[#allocation23_spill]] %s3495_s16 }
   0xb   :  { %s3005_s21 = smov 0   ;;  %s3007_s22 = smov 0  }
   0xc   :  { %s3009_s23 = smov 0   ;;  %s3011_s24 = smov 0  }
   0xd   :  { %s3013_s25 = smov 0   ;;  %s3015_s26 = smov 0  }
   0xe   :  { %s3017_s27 = smov 0  }
   0xf LB: > { %3515 = sst [smem:[#allocation4_spill]] %s2886_s22  ;;  %s36_s28 = sadd.s32 1, %s2898_s25  ;;  %s2906_s27 = sphi %s3017_s27, %s27_s27   ;;  %s2902_s26 = sphi %s3015_s26, %s3555_s26   ;;  %s2898_s25 = sphi %s3013_s25, %s3554_s25   ;;  %s2894_s24 = sphi %s3011_s24, %s3553_s24   ;;  %s2890_s23 = sphi %s3009_s23, %s3552_s23   ;;  %s2886_s22 = sphi %s3007_s22, %s3551_s22   ;;  %s2882_s21 = sphi %s3005_s21, %s3550_s21  }
  0x10   : > { %3516 = sst [smem:[#allocation5_spill]] %s2890_s23  ;;  %p37_p0 = scmp.ge.s32.totalorder %s36_s28, 2 }
  0x11   : > { %3517 = sst [smem:[#allocation6_spill]] %s2894_s24  ;;  %s39_s29 = sadd.s32 1, %s2902_s26 }
  0x12   : > { %3518 = sst [smem:[#allocation7_spill]] %s2898_s25  ;;  %s2533_s30 = sadd.s32 4294967295, %s2906_s27  }
  0x13   : > { %3519 = sst [smem:[#allocation8_spill]] %s2902_s26  ;;  %p464_p1 = scmp.ne.s32.totalorder %s2886_s22, %s2882_s21 }
  0x14   : > { %3520 = sst [smem:[#allocation9_spill]] %s2906_s27  ;;  %s3557_s28 = smov (%p37_p0, %s36_s28), 0 }
  0x15   : > { %3521 = sst [smem:[#allocation10_spill]] %s3557_s28  ;;  %s3559_s29 = smov (!%p37_p0, %s39_s29), %s2902_s26 }
  0x16   : > { %s449_s0 = ssub.s32 %s2898_s25, %s3557_s28  ;;  %p465_p2 = scmp.eq.s32.totalorder %s2533_s30, 3 }
  0x17   : > { %p41_p3 = scmp.ge.s32.totalorder %s3559_s29, 2  ;;  %p2537_p4 = scmp.ge.s32.totalorder %s2906_s27, 1 }
  0x18   : > { %p3051_p5 = por %p465_p2, %p464_p1  ;;  %p582_p6 = scmp.lt.s32.totalorder %s2906_s27, 5 }
  0x19   : > { %s3561_s29 = smov (%p41_p3, %s3559_s29), 0  ;;  %s454_s20 = sadd.s32 1, %s2886_s22 }
  0x1a   : > { %s3522_s17 = scalar_select %p3051_p5, 1, 0 }
  0x1b   : > { %3524 = sst [smem:[#allocation12_spill]] %s3561_s29  ;;  %p583_p7 = pnand %p2537_p4, %p582_p6 }
  0x1c   : > { %3523 = sst [smem:[#allocation11_spill]] %s3522_s17  ;;  %s450_s18 = ssub.s32 %s2902_s26, %s3561_s29 }
  0x1d   : > { %s451_s19 = sor.u32 %s450_s18, %s449_s0  ;;  %s675_s30 = sand.u32 (!%p583_p7), 1, %s2882_s21  }
  0x1e   : > { %p452_p8 = scmp.eq.s32.totalorder %s451_s19, 0  ;;  %586 = sbr.rel (%p583_p7) target bundleno = 2870 (0xb36), region = 80 }
  0x1f   : > { %p678_p9 = scmp.lt.s32.totalorder (!%p583_p7), %s2894_s24, 1  ;;  %s2538_s28 = sshll.u32 (!%p583_p7), %s675_s30, 3 }
  0x20   : > { %s3062_s16 = scalar_select %p452_p8, %s2886_s22, %s454_s20  }
  0x21   : > { %p682_p10 = scmp.lt.s32.totalorder (!%p583_p7), %s2890_s23, 1  ;;  %s3526_s21 = sld [smem:[#allocation14_spill]] (!%p583_p7) }
  0x22   : > { %3525 = sst [smem:[#allocation13_spill]] %s3062_s16 }
  0x23   : > { %s679_s25 = scalar_select %p678_p9, %s2894_s24, 1 }
  0x24   : > { %s3069_s27 = scalar_select %p682_p10, %s2890_s23, 1 }
  0x25   : > { %s2539_s0 = sshll.u32 %s679_s25, 3  ;;  %s3528_s3 = sld [smem:[#allocation16_spill]] }
  0x26   : > { %s2601_s17 = sshll.u32 %s3069_s27, 4  ;;  %s3529_s5 = sld [smem:[#allocation17_spill]] }
  0x27   : > { %s681_s20 = scalar_lea.vmem %s3526_s21, %s2539_s0  ;;  %s3112_s25 = scalar_lea.vmem %s3488_s9, %s2601_s17 }
  0x28   : > { %s717_s11 = scalar_lea.vmem %s3489_s10, %s3069_s27  ;;  %s725_s16 = scalar_lea.vmem %s3491_s12, %s3069_s27 }
  0x29   : > { %s3531_s26 = sld [smem:[#allocation19_spill]] }
  0x2a   : > { %s3533_s15 = sld [smem:[#allocation5_spill]] }
  0x2b   : > { %s3086_s23 = scalar_lea.vmem %s3528_s3, %s2601_s17  ;;  %s3532_s3 = sld [smem:[#allocation22_spill]] }
  0x2c   : > { %s3095_s21 = scalar_lea.vmem %s3529_s5, %s2601_s17  ;;  %s2604_s5 = sshll.u32 %s3069_s27, 6 }
  0x2d   : > { %s3133_s17 = scalar_lea.vmem [#allocation3], %s2538_s28 }
  0x2f   : > { %s3126_s7 = scalar_lea.vmem %s3531_s26, %s2604_s5 }
  0x30   : > { %p2549_p11 = scmp.ne.s32.totalorder %s3533_s15, 0 }
  0x31   : > { %s3131_s2 = scalar_lea.vmem %s3532_s3, %s2539_s0 }
  0x32   : > { %734 = sbr.rel (%p2549_p11) target bundleno = 57 (0x39), region = 84 }
  0x37   : > { %v735_v0 = vld [vmem:[%s681_s20] sm:$0xff]  ;;  %vm736_vm0 = vcmask 261120  }
  0x38   : > { %737 = vst.msk [vmem:[#allocation2] sm:$0xff] %vm736_vm0, %v735_v0 }
  0x39 PF: > { %vm741_vm1 = vcmask 261120   ;;  %v2800_v8 = vld [vmem:[%s3086_s23 + $0x8] sm:$0xff]   ;;  %v2908_v9 = vmov 0.0   ;;  %vm2909_vm2 = vmmov 0   ;;  %v2801_v10 = vld [vmem:[%s3086_s23] sm:$0xff]   ;;  %s3534_s23 = scalar_lea.vmem %s3480_s1, %s3069_s27  ;;  %s3535_s0 = sld [smem:[#allocation15_spill]]  ;;  %v882_v37 = vlaneseq }
  0x3a   : > { %2640 = vmatprep.subr.bf16.mxu0 %v2908_v9  ;;  %2644 = vmatprep.mubr.msk.bf16.mxu0 %vm2909_vm2, %v2908_v9  ;;  %v2550_v20 = vld [vmem:[%s3534_s23] ss:$0 sm:$0xff]  ;;  %s3537_s29 = scalar_lea.vmem %s3483_s4, %s3069_s27  ;;  %s2910_s30 = smov 104   ;;  %v2915_v35 = vmov 1983009808   ;;  %vm1312_vm5 = vcmask 64512  }
  0x3b   : > { %2641 = vmatpush3.bf16.msra.mxu0 %v2800_v8  ;;  %2660 = vmatprep.subr.bf16.mxu1 %v2908_v9  ;;  %v2552_v26 = vld [vmem:[%s3537_s29] ss:$0 sm:$0xff]  ;;  %s2911_s24 = smov 120   ;;  %s2912_s22 = smov 112   ;;  %v880_v36 = vunpack.c.l.s4 %v2915_v35  ;;  %v3192_v39 = vshrl.u32 %v882_v37, 7  ;;  %vm1579_vm7 = vcmask 1043456  }
  0x3c   : > { %2642 = vmatprep.subr.bf16.mxu0 %v2908_v9  ;;  %2662 = vmatprep.mubr.msk.bf16.mxu1 %vm2909_vm2, %v2908_v9  ;;  %s2913_s13 = smov 96   ;;  %s2914_s14 = smov 64   ;;  %v2916_v41 = vmov 1934713408   ;;  %vm1922_vm8 = vcmask 130048   ;;  %vm1924_vm9 = vcmask 195584  }
  0x3d   : > { %v881_v38 = vunpack.c.0.s8 %v880_v36  ;;  %v912_v42 = vunpack.c.l.s4 %v2916_v41  ;;  %s2918_s15 = smov 8   ;;  %s2919_s3 = smov 24   ;;  %vm851_vm10 = vcmask 257024  }
  0x3e   : > { %s3538_s26 = scalar_lea.vmem %s3485_s6, %s3069_s27  ;;  %s3541_s29 = scalar_lea.vmem %s3487_s8, %s3069_s27 }
  0x3f   : > { %v3136_v1 = vld [vmem:[#allocation2] sm:$0xff]  ;;  %2643 = vmatpush3.bf16.msra.mxu0 %v2801_v10  ;;  %s3536_s20 = scalar_lea.vmem %s3535_s0, %s3069_s27  ;;  %v3199_v45 = vsub.s32 %v881_v38, %v3192_v39  ;;  %v913_v49 = vunpack.c.0.s8 %v912_v42  ;;  %s3539_s0 = sld [smem:[#allocation18_spill]] }
  0x40   : > { %v742_v2 = vsel %vm741_vm1, %v3136_v1, 0.0  ;;  %2648 = vmatprep.subr.bf16.mxu0 %v2908_v9  ;;  %v2551_v22 = vld [vmem:[%s3536_s20] ss:$0 sm:$0xff] }
  0x41   : > { %743 = vadd.xlane.f32.xlu0 %v742_v2  ;;  %v3210_v55 = vsub.s32 %v913_v49, %v3192_v39 }
  0x45   : > { %s3540_s20 = scalar_lea.vmem %s3539_s0, %s3069_s27 }
  0xca   : > { %v744_v3 = vpop.xlane.xlu0 %743 }
  0xcb   : > { %v746_v4 = vmul.f32 0.03125, %v744_v3 }
  0xcd   : > { %v747_v5 = vsub.f32 %v3136_v1, %v746_v4 }
  0xcf   : > { %v748_v6 = vmul.f32 %v747_v5, %v747_v5 }
  0xd1   : > { %v749_v7 = vsel %vm741_vm1, %v748_v6, 0.0 }
  0xd2   : > { %750 = vadd.xlane.f32.xlu0 %v749_v7 }
 0x15b   : > { %v751_v11 = vpop.xlane.xlu0 %750 }
 0x15c   : > { %v752_v12 = vmul.f32 0.03125, %v751_v11 }
 0x15e   : > { %v753_v13 = vadd.f32 1e-05, %v752_v12 }
 0x160   : > { %2814 = vrsqrt.f32 %v753_v13  ;;  %vm756_vm3 = vcmp.eq.f32.partialorder %v753_v13, inf  ;;  %v759_v16 = vand.u32 2147483648, %v753_v13  ;;  %vm758_vm4 = vcmp.eq.f32.partialorder %v753_v13, 0.0 }
 0x16d   : > { %v2815_v14 = vpop.eup %2814 }
 0x16e   : > { %v755_v15 = vmul.f32 %v2815_v14, %v753_v13 }
 0x170   : > { %v757_v17 = vsel %vm756_vm3, %v753_v13, %v755_v15 }
 0x171   : > { %v760_v18 = vsel %vm758_vm4, %v759_v16, %v757_v17 }
 0x172   : > { %2816 = vrcp.f32 %v760_v18 }
 0x17f   : > { %v2817_v19 = vpop.eup %2816 }
 0x180   : > { %v762_v21 = vmul.f32 %v2817_v19, %v747_v5 }
 0x182   : > { %v769_v23 = vmul.f32 %v2550_v20, %v762_v21 }
 0x184   : > { %v776_v24 = vadd.f32 %v2551_v22, %v769_v23 }
 0x186   : > { %v781_v25 = vpack.c.bf16 %v776_v24, %v776_v24 }
 0x188   : > { %2645 = vmatmul.mubr.msk.bf16.vlgmr.msra.gmra.mxu0 %vm741_vm1, %v781_v25 }
 0x189   : > { %2650 = vmatprep.mubr.msk.bf16.mxu0 %vm2909_vm2, %v2908_v9 }
 0x248   : > { %v838_v27 = vpop.f32.mrf.mxu0 }
 0x249   : > { %v3170_v28 = vadd.f32 %v2552_v26, %v838_v27 }
 0x24a   : > { %v2646_v29 = vpop.f32.mrf.mxu0 }
 0x24b   : > { %863 = vrot.lane.b32.xlu0 %v3170_v28, %s2910_s30  ;;  %859 = vrot.lane.b32.xlu1 %v3170_v28, %s2911_s24 }
 0x24c   : > { %v841_v30 = vpop.f32.mrf.mxu0 }
 0x24e   : > { %v2647_v31 = vpop.f32.mrf.mxu0 }
 0x24f   : > { %861 = vrot.lane.b32.xlu1 %v3170_v28, %s2912_s22  ;;  %s3542_s22 = sld [smem:[#allocation5_spill]] }
 0x253   : > { %865 = vrot.lane.b32.xlu1 %v3170_v28, %s2913_s13 }
 0x255   : > { %p2593_p12 = scmp.ne.s32.totalorder %s3542_s22, 1 }
 0x2bd   : > { %v3177_v32 = vpop.permute.xlu1 %859  ;;  %v3185_v34 = vpop.permute.xlu0 %863 }
 0x2be   : > { %867 = vrot.lane.b32.xlu1 %v3177_v32, %s2913_s13  ;;  %v1188_v46 = vcombine.low %v3177_v32, %v3185_v34  ;;  %v1189_v47 = vcombine.high %v3177_v32, %v3185_v34 }
 0x2c0   : > { %v1196_v52 = vrot.slane %v1188_v46, %v3199_v45  ;;  %v1203_v53 = vrot.slane %v1189_v47, %v3199_v45 }
 0x2c1   : > { %v3181_v33 = vpop.permute.xlu1 %861 }
 0x2c2   : > { %869 = vrot.lane.b32.xlu1 %v3181_v33, %s2913_s13  ;;  %v1172_v43 = vcombine.low %v3170_v28, %v3181_v33  ;;  %v1173_v44 = vcombine.high %v3170_v28, %v3181_v33 }
 0x2c4   : > { %v1180_v50 = vrot.slane %v1172_v43, %v3199_v45  ;;  %v1187_v51 = vrot.slane %v1173_v44, %v3199_v45 }
 0x2c5   : > { %v866_v40 = vpop.permute.xlu1 %865 }
 0x2c6   : > { %871 = vrot.lane.b32.xlu1 %v3185_v34, %s2913_s13  ;;  %v1204_v56 = vcombine.low %v1180_v50, %v1196_v52  ;;  %v1205_v57 = vcombine.high %v1180_v50, %v1196_v52  ;;  %v1220_v58 = vcombine.low %v1187_v51, %v1203_v53  ;;  %v1221_v59 = vcombine.high %v1187_v51, %v1203_v53 }
 0x2c8   : > { %v1212_v2 = vrot.slane %v1204_v56, %v3210_v55  ;;  %v1219_v3 = vrot.slane %v1205_v57, %v3210_v55  ;;  %v1228_v4 = vrot.slane %v1220_v58, %v3210_v55  ;;  %v1235_v5 = vrot.slane %v1221_v59, %v3210_v55 }
 0x2ca   : > { %1017 = vrot.lane.b32.xlu1 %v3170_v28, %s2914_s14  ;;  %v1240_v15 = vcombine.low %v1212_v2, %v1219_v3  ;;  %v2562_v16 = vcombine.high %v1212_v2, %v1219_v3  ;;  %v1256_v17 = vcombine.low %v1228_v4, %v1235_v5  ;;  %v2563_v18 = vcombine.high %v1228_v4, %v1235_v5 }
 0x2cc   : > { %v1247_v27 = vrot.slane %v1240_v15, %v3199_v45  ;;  %v1255_v29 = vrot.slane %v2562_v16, %v3199_v45  ;;  %v1263_v30 = vrot.slane %v1256_v17, %v3199_v45  ;;  %v1271_v31 = vrot.slane %v2563_v18, %v3199_v45 }
 0x2cd   : > { %v1504_v17 = vand.u32 127, %v882_v37 }
 0x2ce   : > { %v1272_v46 = vcombine.low %v1247_v27, %v1255_v29  ;;  %v1288_v47 = vcombine.low %v1263_v30, %v1271_v31  ;;  %v1289_v49 = vcombine.high %v1263_v30, %v1271_v31 }
 0x2cf   : > { %vm1505_vm6 = vcmp.le.s32.totalorder %v1504_v17, %v3192_v39 }
 0x2d0   : > { %v1280_v57 = vrot.slane %v1272_v46, %v3210_v55  ;;  %v1296_v58 = vrot.slane %v1288_v47, %v3210_v55 }
 0x2d2   : > { %v1304_v3 = vcombine.low %v1280_v57, %v1296_v58 }
 0x330   : > { %v868_v48 = vpop.permute.xlu1 %867 }
 0x334   : > { %v870_v54 = vpop.permute.xlu1 %869 }
 0x335   : > { %v877_v60 = vcombine.low %v866_v40, %v870_v54  ;;  %v878_v61 = vcombine.high %v866_v40, %v870_v54 }
 0x337   : > { %v885_v6 = vrot.slane %v877_v60, %v3199_v45  ;;  %v892_v7 = vrot.slane %v878_v61, %v3199_v45 }
 0x338   : > { %v872_v62 = vpop.permute.xlu1 %871 }
 0x339   : > { %v893_v63 = vcombine.low %v868_v48, %v872_v62  ;;  %v894_v0 = vcombine.high %v868_v48, %v872_v62  ;;  %v1273_v48 = vcombine.high %v1247_v27, %v1255_v29  ;;  %v1303_v62 = vrot.slane %v1289_v49, %v3210_v55 }
 0x33b   : > { %v901_v8 = vrot.slane %v893_v63, %v3199_v45  ;;  %v908_v10 = vrot.slane %v894_v0, %v3199_v45  ;;  %v1287_v61 = vrot.slane %v1273_v48, %v3210_v55 }
 0x33d   : > { %v909_v11 = vcombine.low %v885_v6, %v901_v8  ;;  %v910_v12 = vcombine.high %v885_v6, %v901_v8  ;;  %v925_v13 = vcombine.low %v892_v7, %v908_v10  ;;  %v926_v14 = vcombine.high %v892_v7, %v908_v10 }
 0x33e   : > { %v1306_v4 = vcombine.low %v1287_v61, %v1303_v62  ;;  %v1308_v6 = vpack.c.bf16 %v1304_v3, %v1304_v3  ;;  %v1307_v15 = vcombine.high %v1287_v61, %v1303_v62 }
 0x33f   : > { %v917_v19 = vrot.slane %v909_v11, %v3210_v55  ;;  %v924_v20 = vrot.slane %v910_v12, %v3210_v55  ;;  %v933_v21 = vrot.slane %v925_v13, %v3210_v55  ;;  %v940_v22 = vrot.slane %v926_v14, %v3210_v55 }
 0x340   : > { %v1310_v7 = vpack.c.bf16 %v1306_v4, %v1306_v4  ;;  %v1305_v11 = vcombine.high %v1280_v57, %v1296_v58  ;;  %v1311_v16 = vpack.c.bf16 %v1307_v15, %v1307_v15 }
 0x341   : > { %v945_v23 = vcombine.low %v917_v19, %v924_v20  ;;  %v2558_v24 = vcombine.high %v917_v19, %v924_v20  ;;  %v961_v25 = vcombine.low %v933_v21, %v940_v22  ;;  %v2559_v26 = vcombine.high %v933_v21, %v940_v22 }
 0x342   : > { %v1309_v13 = vpack.c.bf16 %v1305_v11, %v1305_v11 }
 0x343   : > { %v952_v35 = vrot.slane %v945_v23, %v3199_v45  ;;  %v960_v36 = vrot.slane %v2558_v24, %v3199_v45  ;;  %v968_v38 = vrot.slane %v961_v25, %v3199_v45  ;;  %v976_v40 = vrot.slane %v2559_v26, %v3199_v45 }
 0x345   : > { %v977_v41 = vcombine.low %v952_v35, %v960_v36  ;;  %v993_v42 = vcombine.low %v968_v38, %v976_v40  ;;  %v978_v43 = vcombine.high %v952_v35, %v960_v36  ;;  %v994_v44 = vcombine.high %v968_v38, %v976_v40 }
 0x347   : > { %v985_v50 = vrot.slane %v977_v41, %v3210_v55  ;;  %v1001_v51 = vrot.slane %v993_v42, %v3210_v55  ;;  %v992_v52 = vrot.slane %v978_v43, %v3210_v55  ;;  %v1008_v53 = vrot.slane %v994_v44, %v3210_v55 }
 0x349   : > { %v1009_v54 = vcombine.low %v985_v50, %v1001_v51  ;;  %v1011_v56 = vcombine.low %v992_v52, %v1008_v53  ;;  %v1010_v2 = vcombine.high %v985_v50, %v1001_v51  ;;  %v1012_v10 = vcombine.high %v992_v52, %v1008_v53  ;;  %v1018_v52 = vpop.permute.xlu1 %1017 }
 0x34b   : > { %v1013_v59 = vpack.c.bf16 %v1009_v54, %v1009_v54  ;;  %v1015_v60 = vpack.c.bf16 %v1011_v56, %v1011_v56  ;;  %v1014_v5 = vpack.c.bf16 %v1010_v2, %v1010_v2  ;;  %v1016_v12 = vpack.c.bf16 %v1012_v10, %v1012_v10 }
 0x34d   : > { %v1317_v63 = vsel %vm1312_vm5, %v1013_v59, 0  ;;  %v1409_v0 = vsel %vm1312_vm5, %v1015_v60, 0  ;;  %v1363_v8 = vsel %vm1312_vm5, %v1014_v5, 0  ;;  %v1455_v14 = vsel %vm1312_vm5, %v1016_v12, 0 }
 0x34e   : > { %2649 = vmatpush3.bf16.xpose.msra.mxu0 %v1317_v63  ;;  %2661 = vmatpush3.bf16.xpose.msra.mxu1 %v1409_v0 }
 0x34f   : > { %2654 = vmatprep.subr.bf16.mxu0 %v2908_v9  ;;  %2672 = vmatprep.subr.bf16.mxu1 %v2908_v9 }
 0x355   : > { %2651 = vmatmul.mubr.msk.bf16.vlgmr.msra.gmra.mxu0 %vm1312_vm5, %v1308_v6  ;;  %2663 = vmatmul.mubr.msk.bf16.vlgmr.msra.gmra.mxu1 %vm1312_vm5, %v1310_v7 }
 0x356   : > { %2655 = vmatpush3.bf16.xpose.msra.mxu0 %v1363_v8  ;;  %2656 = vmatprep.mubr.msk.bf16.mxu0 %vm2909_vm2, %v2908_v9 }
 0x357   : > { %2666 = vmatprep.subr.bf16.mxu0 %v2908_v9  ;;  %2674 = vmatprep.mubr.msk.bf16.mxu1 %vm2909_vm2, %v2908_v9 }
 0x35d   : > { %2657 = vmatmul.mubr.msk.bf16.vlgmr.msra.gmra.mxu0 %vm1312_vm5, %v1309_v13 }
 0x35e   : > { %2667 = vmatpush3.bf16.xpose.msra.mxu0 %v1455_v14  ;;  %2668 = vmatprep.mubr.msk.bf16.mxu0 %vm2909_vm2, %v2908_v9 }
 0x35f   : > { %2678 = vmatprep.subr.bf16.mxu0 %v2908_v9 }
 0x365   : > { %2669 = vmatmul.mubr.msk.bf16.vlgmr.msra.gmra.mxu0 %vm1312_vm5, %v1311_v16 }
 0x366   : > { %2680 = vmatprep.mubr.msk.bf16.mxu0 %vm2909_vm2, %v2908_v9 }
 0x415   : > { %v1353_v18 = vpop.f32.mrf.mxu0  ;;  %v1445_v19 = vpop.f32.mrf.mxu1 }
 0x416   : > { %v1497_v20 = vmul.f32 0.35355338, %v1353_v18  ;;  %v1499_v21 = vmul.f32 0.35355338, %v1445_v19 }
 0x417   : > { %v2652_v22 = vpop.f32.mrf.mxu0  ;;  %v2664_v23 = vpop.f32.mrf.mxu1 }
 0x418   : > { %v1508_v24 = vsel %vm1505_vm6, %v1497_v20, -1e+10  ;;  %v1510_v29 = vsel %vm1505_vm6, %v1499_v21, -1e+10 }
 0x419   : > { %v1356_v25 = vpop.f32.mrf.mxu0  ;;  %v1448_v26 = vpop.f32.mrf.mxu1  ;;  %v1512_v27 = vsel %vm1312_vm5, %v1508_v24, -inf  ;;  %v1518_v35 = vsel %vm1312_vm5, %v1510_v29, -inf }
 0x41a   : > { %1513 = vmax.xlane.f32.xlu1 %v1512_v27 }
 0x41b   : > { %v2653_v37 = vpop.f32.mrf.mxu0  ;;  %v2665_v30 = vpop.f32.mrf.mxu1 }
 0x41d   : > { %v1399_v31 = vpop.f32.mrf.mxu0 }
 0x41e   : > { %v1498_v36 = vmul.f32 0.35355338, %v1399_v31  ;;  %1519 = vmax.xlane.f32.xlu1 %v1518_v35 }
 0x41f   : > { %v2658_v38 = vpop.f32.mrf.mxu0 }
 0x420   : > { %v1509_v40 = vsel %vm1505_vm6, %v1498_v36, -1e+10 }
 0x421   : > { %v1402_v41 = vpop.f32.mrf.mxu0  ;;  %v1515_v42 = vsel %vm1312_vm5, %v1509_v40, -inf }
 0x422   : > { %1516 = vmax.xlane.f32.xlu0 %v1515_v42 }
 0x423   : > { %v2659_v43 = vpop.f32.mrf.mxu0 }
 0x425   : > { %v1491_v44 = vpop.f32.mrf.mxu0 }
 0x426   : > { %v1500_v46 = vmul.f32 0.35355338, %v1491_v44 }
 0x427   : > { %v2670_v47 = vpop.f32.mrf.mxu0 }
 0x428   : > { %v1511_v48 = vsel %vm1505_vm6, %v1500_v46, -1e+10 }
 0x429   : > { %v1494_v49 = vpop.f32.mrf.mxu0  ;;  %v1521_v50 = vsel %vm1312_vm5, %v1511_v48, -inf }
 0x42a   : > { %1522 = vmax.xlane.f32.xlu0 %v1521_v50 }
 0x42b   : > { %v2671_v51 = vpop.f32.mrf.mxu0 }
 0x42f   : > { %1021 = vrot.lane.b32.xlu1 %v3181_v33, %s2914_s14 }
 0x433   : > { %1023 = vrot.lane.b32.xlu1 %v3185_v34, %s2914_s14 }
 0x440   : > { %1019 = vrot.lane.b32.xlu0 %v3177_v32, %s2914_s14 }
 0x4a3   : > { %v3280_v53 = vpop.xlane.xlu1 %1513 }
 0x4a4   : > { %v1524_v39 = vmax.f32 %v3280_v53, -1e+30 }
 0x4a6   : > { %v1540_v54 = vsub.f32 %v1508_v24, %v1524_v39 }
 0x4a7   : > { %v3285_v56 = vpop.xlane.xlu1 %1519 }
 0x4a8   : > { %v1544_v57 = vmul.f32 1.442695, %v1540_v54  ;;  %v1526_v58 = vmax.f32 %v3285_v56, -1e+30 }
 0x4aa   : > { %v1542_v33 = vsub.f32 %v1510_v29, %v1526_v58  ;;  %2818 = vpow2.f32 %v1544_v57 }
 0x4ab   : > { %v3290_v34 = vpop.xlane.xlu0 %1516  ;;  %v1022_v61 = vpop.permute.xlu1 %1021 }
 0x4ac   : > { %v1548_v32 = vmul.f32 1.442695, %v1542_v33  ;;  %v1525_v59 = vmax.f32 %v3290_v34, -1e+30  ;;  %v1029_v2 = vcombine.low %v1018_v52, %v1022_v61  ;;  %v1030_v3 = vcombine.high %v1018_v52, %v1022_v61 }
 0x4ae   : > { %2820 = vpow2.f32 %v1548_v32  ;;  %v1541_v60 = vsub.f32 %v1509_v40, %v1525_v59  ;;  %v1037_v13 = vrot.slane %v1029_v2, %v3199_v45  ;;  %v1044_v14 = vrot.slane %v1030_v3, %v3199_v45 }
 0x4af   : > { %v1024_v5 = vpop.permute.xlu1 %1023 }
 0x4b0   : > { %v1546_v62 = vmul.f32 1.442695, %v1541_v60 }
 0x4b2   : > { %2822 = vpow2.f32 %v1546_v62 }
 0x4b3   : > { %v3295_v63 = vpop.xlane.xlu0 %1522 }
 0x4b4   : > { %v1527_v0 = vmax.f32 %v3295_v63, -1e+30 }
 0x4b6   : > { %v1543_v4 = vsub.f32 %v1511_v48, %v1527_v0 }
 0x4b7   : > { %v1020_v6 = vpop.permute.xlu0 %1019  ;;  %v2819_v7 = vpop.eup %2818 }
 0x4b8   : > { %v1550_v8 = vmul.f32 1.442695, %v1543_v4  ;;  %v1045_v10 = vcombine.low %v1020_v6, %v1024_v5  ;;  %v1046_v11 = vcombine.high %v1020_v6, %v1024_v5  ;;  %v1556_v12 = vsel %vm1312_vm5, %v2819_v7, 0.0 }
 0x4b9   : > { %1557 = vadd.xlane.f32.xlu0 %v1556_v12  ;;  %v1572_v5 = vpack.c.bf16 %v2819_v7, %v2819_v7  ;;  %v1528_v12 = vsub.f32 -1e+30, %v1524_v39 }
 0x4ba   : > { %v1053_v15 = vrot.slane %v1045_v10, %v3199_v45  ;;  %v1060_v16 = vrot.slane %v1046_v11, %v3199_v45  ;;  %2824 = vpow2.f32 %v1550_v8 }
 0x4bb   : > { %v3305_v17 = vpop.eup %2820 }
 0x4bc   : > { %v1061_v18 = vcombine.low %v1037_v13, %v1053_v15  ;;  %v1062_v19 = vcombine.high %v1037_v13, %v1053_v15  ;;  %v1077_v20 = vcombine.low %v1044_v14, %v1060_v16  ;;  %v1078_v21 = vcombine.high %v1044_v14, %v1060_v16 }
 0x4bd   : > { %v1562_v22 = vsel %vm1312_vm5, %v3305_v17, 0.0  ;;  %v1574_v7 = vpack.c.bf16 %v3305_v17, %v3305_v17  ;;  %v1530_v13 = vsub.f32 -1e+30, %v1526_v58  ;;  %v1529_v14 = vsub.f32 -1e+30, %v1525_v59 }
 0x4be   : > { %v1069_v23 = vrot.slane %v1061_v18, %v3210_v55  ;;  %v1076_v24 = vrot.slane %v1062_v19, %v3210_v55  ;;  %v1085_v25 = vrot.slane %v1077_v20, %v3210_v55  ;;  %v1092_v26 = vrot.slane %v1078_v21, %v3210_v55  ;;  %1563 = vadd.xlane.f32.xlu0 %v1562_v22 }
 0x4bf   : > { %v2823_v31 = vpop.eup %2822  ;;  %v1531_v15 = vsub.f32 -1e+30, %v1527_v0  ;;  %v1532_v16 = vmul.f32 1.442695, %v1528_v12  ;;  %v1536_v17 = vmul.f32 1.442695, %v1530_v13 }
 0x4c0   : > { %v1097_v27 = vcombine.low %v1069_v23, %v1076_v24  ;;  %v2560_v29 = vcombine.high %v1069_v23, %v1076_v24  ;;  %v1113_v37 = vcombine.low %v1085_v25, %v1092_v26  ;;  %v2561_v30 = vcombine.high %v1085_v25, %v1092_v26 }
 0x4c1   : > { %v1559_v41 = vsel %vm1312_vm5, %v2823_v31, 0.0  ;;  %v1573_v6 = vpack.c.bf16 %v2823_v31, %v2823_v31  ;;  %v1534_v18 = vmul.f32 1.442695, %v1529_v14  ;;  %v1538_v19 = vmul.f32 1.442695, %v1531_v15 }
 0x4c2   : > { %v1104_v35 = vrot.slane %v1097_v27, %v3199_v45  ;;  %v1112_v36 = vrot.slane %v2560_v29, %v3199_v45  ;;  %v1120_v38 = vrot.slane %v1113_v37, %v3199_v45  ;;  %v1128_v40 = vrot.slane %v2561_v30, %v3199_v45  ;;  %1560 = vadd.xlane.f32.xlu1 %v1559_v41 }
 0x4c3   : > { %2826 = vpow2.f32 %v1532_v16 }
 0x4c4   : > { %v1129_v42 = vcombine.low %v1104_v35, %v1112_v36  ;;  %v1145_v43 = vcombine.low %v1120_v38, %v1128_v40  ;;  %v1130_v44 = vcombine.high %v1104_v35, %v1112_v36  ;;  %v1146_v46 = vcombine.high %v1120_v38, %v1128_v40 }
 0x4c5   : > { %2828 = vpow2.f32 %v1536_v17  ;;  %v2802_v17 = vld [vmem:[%s3095_s21 + $0x8] sm:$0xff]  }
 0x4c6   : > { %v1137_v47 = vrot.slane %v1129_v42, %v3210_v55  ;;  %v1153_v48 = vrot.slane %v1145_v43, %v3210_v55  ;;  %v1144_v49 = vrot.slane %v1130_v44, %v3210_v55  ;;  %v1160_v50 = vrot.slane %v1146_v46, %v3210_v55 }
 0x4c7   : > { %v2825_v51 = vpop.eup %2824  ;;  %2830 = vpow2.f32 %v1534_v18 }
 0x4c8   : > { %v1161_v52 = vcombine.low %v1137_v47, %v1153_v48  ;;  %v1162_v54 = vcombine.high %v1137_v47, %v1153_v48  ;;  %v1163_v57 = vcombine.low %v1144_v49, %v1160_v50  ;;  %v1164_v33 = vcombine.high %v1144_v49, %v1160_v50 }
 0x4c9   : > { %v1565_v32 = vsel %vm1312_vm5, %v2825_v51, 0.0  ;;  %v1575_v11 = vpack.c.bf16 %v2825_v51, %v2825_v51  ;;  %2832 = vpow2.f32 %v1538_v19 }
 0x4ca   : > { %1566 = vadd.xlane.f32.xlu0 %v1565_v32  ;;  %v1165_v60 = vpack.c.bf16 %v1161_v52, %v1161_v52  ;;  %v1166_v61 = vpack.c.bf16 %v1162_v54, %v1162_v54  ;;  %v1167_v3 = vpack.c.bf16 %v1163_v57, %v1163_v57  ;;  %v1168_v4 = vpack.c.bf16 %v1164_v33, %v1164_v33 }
 0x4cc   : > { %v1581_v62 = vsel %vm1579_vm7, %v1165_v60, 0  ;;  %v1627_v2 = vsel %vm1579_vm7, %v1166_v61, 0  ;;  %v1673_v8 = vsel %vm1579_vm7, %v1167_v3, 0  ;;  %v1719_v10 = vsel %vm1579_vm7, %v1168_v4, 0 }
 0x4cd   : > { %2673 = vmatpush3.bf16.msra.mxu1 %v1581_v62  ;;  %2679 = vmatpush3.bf16.msra.mxu0 %v1627_v2 }
 0x4ce   : > { %2684 = vmatprep.subr.bf16.mxu1 %v2908_v9  ;;  %2690 = vmatprep.subr.bf16.mxu0 %v2908_v9 }
 0x4d0   : > { %2675 = vmatmul.mubr.msk.bf16.vlgmr.msra.gmra.mxu1 %vm1312_vm5, %v1572_v5  ;;  %2681 = vmatmul.mubr.msk.bf16.vlgmr.msra.gmra.mxu0 %vm1312_vm5, %v1573_v6  ;;  %v2827_v53 = vpop.eup %2826 }
 0x4d1   : > { %2685 = vmatpush3.bf16.msra.mxu1 %v1673_v8  ;;  %2691 = vmatpush3.bf16.msra.mxu0 %v1719_v10  ;;  %v1552_v22 = vmul.f32 0.0, %v2827_v53 }
 0x4d2   : > { %2686 = vmatprep.mubr.msk.bf16.mxu1 %vm2909_vm2, %v2908_v9  ;;  %2692 = vmatprep.mubr.msk.bf16.mxu0 %vm2909_vm2, %v2908_v9  ;;  %v2829_v39 = vpop.eup %2828 }
 0x4d3   : > { %2696 = vmatprep.subr.bf16.mxu1 %v2908_v9  ;;  %2704 = vmatprep.subr.bf16.mxu0 %v2908_v9  ;;  %v1554_v34 = vmul.f32 0.0, %v2829_v39 }
 0x4d4   : > { %v2831_v56 = vpop.eup %2830 }
 0x4d5   : > { %v1553_v63 = vmul.f32 0.0, %v2831_v56 }
 0x4d6   : > { %v2833_v58 = vpop.eup %2832 }
 0x4d7   : > { %v1555_v25 = vmul.f32 0.0, %v2833_v58 }
 0x4d8   : > { %2687 = vmatmul.mubr.msk.bf16.vlgmr.msra.gmra.mxu1 %vm1312_vm5, %v1574_v7  ;;  %2693 = vmatmul.mubr.msk.bf16.vlgmr.msra.gmra.mxu0 %vm1312_vm5, %v1575_v11 }
 0x4d9   : > { %2700 = vmatprep.mubr.msk.bf16.mxu1 %vm2909_vm2, %v2908_v9  ;;  %2708 = vmatprep.mubr.msk.bf16.mxu0 %vm2909_vm2, %v2908_v9 }
 0x4da   : > { %2697 = vmatpush3.bf16.msra.mxu1 %v2802_v17 }
 0x4db   : > { %2698 = vmatprep.subr.bf16.mxu1 %v2908_v9 }
 0x542   : > { %v1558_v20 = vpop.xlane.xlu0 %1557 }
 0x543   : > { %v1568_v23 = vadd.f32 %v1558_v20, %v1552_v22 }
 0x545   : > { %2834 = vrcp.f32 %v1568_v23 }
 0x547   : > { %v1564_v21 = vpop.xlane.xlu0 %1563 }
 0x548   : > { %v1570_v24 = vadd.f32 %v1564_v21, %v1554_v34 }
 0x54a   : > { %2836 = vrcp.f32 %v1570_v24 }
 0x54b   : > { %v1561_v59 = vpop.xlane.xlu1 %1560 }
 0x54c   : > { %v1569_v26 = vadd.f32 %v1561_v59, %v1553_v63 }
 0x54e   : > { %2838 = vrcp.f32 %v1569_v26 }
 0x552   : > { %v2835_v41 = vpop.eup %2834 }
 0x553   : > { %v1567_v0 = vpop.xlane.xlu0 %1566 }
 0x554   : > { %v1571_v27 = vadd.f32 %v1567_v0, %v1555_v25 }
 0x556   : > { %2840 = vrcp.f32 %v1571_v27 }
 0x557   : > { %v2837_v44 = vpop.eup %2836 }
 0x55b   : > { %v2839_v48 = vpop.eup %2838 }
 0x563   : > { %v2841_v51 = vpop.eup %2840 }
 0x590   : > { %v1617_v29 = vpop.f32.mrf.mxu1  ;;  %v1663_v37 = vpop.f32.mrf.mxu0 }
 0x591   : > { %v1761_v42 = vadd.f32 %v1617_v29, %v1552_v22  ;;  %v1762_v43 = vadd.f32 %v1663_v37, %v1553_v63  ;;  %v2803_v63 = vld [vmem:[%s3095_s21] sm:$0xff]   ;;  %s2917_s21 = smov 16  }
 0x592   : > { %v2676_v30 = vpop.f32.mrf.mxu1  ;;  %v2682_v31 = vpop.f32.mrf.mxu0  ;;  %2699 = vmatpush3.bf16.msra.mxu1 %v2803_v63 }
 0x593   : > { %v1766_v57 = vmul.f32 %v2835_v41, %v1761_v42  ;;  %v1768_v33 = vmul.f32 %v2839_v48, %v1762_v43  ;;  %2712 = vmatprep.subr.bf16.mxu1 %v2908_v9 }
 0x594   : > { %v1620_v35 = vpop.f32.mrf.mxu1  ;;  %v1666_v36 = vpop.f32.mrf.mxu0 }
 0x596   : > { %v2677_v38 = vpop.f32.mrf.mxu1  ;;  %v2683_v40 = vpop.f32.mrf.mxu0 }
 0x598   : > { %v1709_v46 = vpop.f32.mrf.mxu1  ;;  %v1755_v47 = vpop.f32.mrf.mxu0 }
 0x599   : > { %v1763_v49 = vadd.f32 %v1709_v46, %v1554_v34  ;;  %v1764_v50 = vadd.f32 %v1755_v47, %v1555_v25  ;;  %v2574_v46 = vld [vmem:[%s3538_s26] ss:$0 sm:$0xff] }
 0x59a   : > { %v2688_v52 = vpop.f32.mrf.mxu1  ;;  %v2694_v54 = vpop.f32.mrf.mxu0 }
 0x59b   : > { %v1770_v32 = vmul.f32 %v2837_v44, %v1763_v49  ;;  %v1772_v60 = vmul.f32 %v2841_v51, %v1764_v50 }
 0x59c   : > { %v1712_v61 = vpop.f32.mrf.mxu1  ;;  %v1758_v62 = vpop.f32.mrf.mxu0 }
 0x59d   : > { %v1773_v2 = vcombine.low %v1766_v57, %v1770_v32  ;;  %v1774_v3 = vcombine.high %v1766_v57, %v1770_v32  ;;  %v1789_v4 = vcombine.low %v1768_v33, %v1772_v60  ;;  %v1790_v5 = vcombine.high %v1768_v33, %v1772_v60 }
 0x59e   : > { %v2689_v6 = vpop.f32.mrf.mxu1  ;;  %v2695_v8 = vpop.f32.mrf.mxu0  ;;  %v2605_v57 = vpack.c.bf16 %v3170_v28, %v3170_v28  ;;  %v2805_v28 = vld [vmem:[%s3112_s25] sm:$0xff]  }
 0x59f   : > { %v1781_v10 = vrot.slane %v1773_v2, %v3199_v45  ;;  %v1788_v7 = vrot.slane %v1774_v3, %v3199_v45  ;;  %v1797_v11 = vrot.slane %v1789_v4, %v3199_v45  ;;  %v1804_v12 = vrot.slane %v1790_v5, %v3199_v45  ;;  %v2804_v2 = vld [vmem:[%s3112_s25 + $0x8] sm:$0xff]  }
 0x5a0   : > { %2705 = vmatpush3.bf16.msra.mxu0 %v2804_v2 }
 0x5a1   : > { %v1805_v13 = vcombine.low %v1781_v10, %v1797_v11  ;;  %v1806_v14 = vcombine.high %v1781_v10, %v1797_v11  ;;  %v1821_v15 = vcombine.low %v1788_v7, %v1804_v12  ;;  %v1822_v16 = vcombine.high %v1788_v7, %v1804_v12  ;;  %2706 = vmatprep.subr.bf16.mxu0 %v2908_v9 }
 0x5a3   : > { %v1813_v18 = vrot.slane %v1805_v13, %v3210_v55  ;;  %v1820_v19 = vrot.slane %v1806_v14, %v3210_v55  ;;  %v1829_v20 = vrot.slane %v1821_v15, %v3210_v55  ;;  %v1836_v53 = vrot.slane %v1822_v16, %v3210_v55  ;;  %v2578_v14 = vld [vmem:[%s3540_s20] ss:$0 sm:$0xff] }
 0x5a4   : > { %2707 = vmatpush3.bf16.msra.mxu0 %v2805_v28  ;;  %v2579_v16 = vld [vmem:[%s3541_s29] ss:$0 sm:$0xff] }
 0x5a5   : > { %v1841_v39 = vcombine.low %v1813_v18, %v1820_v19  ;;  %v2572_v21 = vcombine.high %v1813_v18, %v1820_v19  ;;  %v1857_v56 = vcombine.low %v1829_v20, %v1836_v53  ;;  %v2573_v58 = vcombine.high %v1829_v20, %v1836_v53  ;;  %v2806_v20 = vld [vmem:[%s3126_s7 + $0x38] sm:$0xff]   ;;  %v2807_v53 = vld [vmem:[%s3126_s7 + $0x30] sm:$0xff]  }
 0x5a7   : > { %v1848_v22 = vrot.slane %v1841_v39, %v3199_v45  ;;  %v1856_v34 = vrot.slane %v2572_v21, %v3199_v45  ;;  %v1864_v59 = vrot.slane %v1857_v56, %v3199_v45  ;;  %v1872_v23 = vrot.slane %v2573_v58, %v3199_v45  ;;  %v2808_v39 = vld [vmem:[%s3126_s7 + $0x28] sm:$0xff]   ;;  %v2809_v21 = vld [vmem:[%s3126_s7 + $0x20] sm:$0xff]   ;;  %v2810_v56 = vld [vmem:[%s3126_s7 + $0x18] sm:$0xff]  }
 0x5a8   : > { %v2811_v58 = vld [vmem:[%s3126_s7 + $0x10] sm:$0xff]  }
 0x5a9   : > { %v1874_v0 = vcombine.high %v1848_v22, %v1856_v34  ;;  %v1890_v24 = vcombine.high %v1864_v59, %v1872_v23  ;;  %v1873_v25 = vcombine.low %v1848_v22, %v1856_v34  ;;  %v1889_v26 = vcombine.low %v1864_v59, %v1872_v23  ;;  %v2812_v22 = vld [vmem:[%s3126_s7 + $0x8] sm:$0xff]   ;;  %v2813_v34 = vld [vmem:[%s3126_s7] sm:$0xff]  }
 0x5aa   : > { %v2580_v59 = vld [vmem:[%s717_s11] ss:$0 sm:$0xff] }
 0x5ab   : > { %v1888_v27 = vrot.slane %v1874_v0, %v3210_v55  ;;  %v1904_v29 = vrot.slane %v1890_v24, %v3210_v55  ;;  %v1881_v37 = vrot.slane %v1873_v25, %v3210_v55  ;;  %v1897_v30 = vrot.slane %v1889_v26, %v3210_v55 }
 0x5ad   : > { %v1907_v31 = vcombine.low %v1888_v27, %v1904_v29  ;;  %v1906_v35 = vcombine.high %v1881_v37, %v1897_v30  ;;  %v1908_v36 = vcombine.high %v1888_v27, %v1904_v29  ;;  %v1905_v45 = vcombine.low %v1881_v37, %v1897_v30 }
 0x5af   : > { %1914 = vrot.lane.b32.xlu0 %v1907_v31, %s2917_s21  ;;  %1910 = vrot.lane.b32.xlu1 %v1906_v35, %s2918_s15  ;;  %s3544_s15 = sld [smem:[#allocation21_spill]] (!%p2593_p12) }
 0x5b3   : > { %1918 = vrot.lane.b32.xlu1 %v1908_v36, %s2919_s3 }
 0x621   : > { %v1911_v38 = vpop.permute.xlu1 %1910  ;;  %v1915_v40 = vpop.permute.xlu0 %1914 }
 0x622   : > { %v1921_v41 = vsel %vm1312_vm5, %v1905_v45, %v1911_v38  ;;  %v2584_v38 = vld [vmem:[%s725_s16] ss:$0 sm:$0xff] }
 0x623   : > { %v1923_v43 = vsel %vm1922_vm8, %v1921_v41, %v1915_v40 }
 0x625   : > { %v1919_v42 = vpop.permute.xlu1 %1918 }
 0x626   : > { %v1925_v55 = vsel %vm1924_vm9, %v1923_v43, %v1919_v42 }
 0x627   : > { %v1930_v44 = vpack.c.bf16 %v1925_v55, %v1925_v55 }
 0x629   : > { %2701 = vmatmul.mubr.msk.bf16.vlgmr.msra.gmra.mxu1 %vm741_vm1, %v1930_v44 }
 0x62a   : > { %2728 = vmatprep.mubr.msk.bf16.mxu1 %vm2909_vm2, %v2908_v9  ;;  %2713 = vmatpush3.bf16.msra.mxu1 %v2806_v20 }
 0x62b   : > { %2714 = vmatprep.subr.bf16.mxu1 %v2908_v9 }
 0x62e   : > { %2715 = vmatpush3.bf16.msra.mxu1 %v2807_v53 }
 0x62f   : > { %2716 = vmatprep.subr.bf16.mxu1 %v2908_v9 }
 0x632   : > { %2717 = vmatpush3.bf16.msra.mxu1 %v2808_v39 }
 0x633   : > { %2718 = vmatprep.subr.bf16.mxu1 %v2908_v9 }
 0x636   : > { %2719 = vmatpush3.bf16.msra.mxu1 %v2809_v21 }
 0x637   : > { %2720 = vmatprep.subr.bf16.mxu1 %v2908_v9 }
 0x63a   : > { %2721 = vmatpush3.bf16.msra.mxu1 %v2810_v56 }
 0x63b   : > { %2722 = vmatprep.subr.bf16.mxu1 %v2908_v9 }
 0x63e   : > { %2723 = vmatpush3.bf16.msra.mxu1 %v2811_v58 }
 0x63f   : > { %2724 = vmatprep.subr.bf16.mxu1 %v2908_v9 }
 0x642   : > { %2725 = vmatpush3.bf16.msra.mxu1 %v2812_v22 }
 0x643   : > { %2726 = vmatprep.subr.bf16.mxu1 %v2908_v9 }
 0x646   : > { %2727 = vmatpush3.bf16.msra.mxu1 %v2813_v34 }
 0x6e9   : > { %v1987_v47 = vpop.f32.mrf.mxu1 }
 0x6ea   : > { %v1988_v48 = vadd.f32 %v2574_v46, %v1987_v47 }
 0x6eb   : > { %v2702_v49 = vpop.f32.mrf.mxu1 }
 0x6ec   : > { %v3383_v50 = vadd.f32 %v1988_v48, %v3136_v1 }
 0x6ed   : > { %v1990_v51 = vpop.f32.mrf.mxu1 }
 0x6ee   : > { %v1996_v52 = vsel %vm741_vm1, %v3383_v50, 0.0 }
 0x6ef   : > { %1997 = vadd.xlane.f32.xlu1 %v1996_v52  ;;  %v2703_v54 = vpop.f32.mrf.mxu1 }
 0x700   : > { %853 = vrot.lane.b32.xlu1 %v2605_v57, %s2914_s14 }
 0x778   : > { %v1998_v33 = vpop.xlane.xlu1 %1997 }
 0x779   : > { %v1999_v32 = vmul.f32 0.03125, %v1998_v33 }
 0x77b   : > { %v2000_v60 = vsub.f32 %v3383_v50, %v1999_v32 }
 0x77c   : > { %v854_v1 = vpop.permute.xlu1 %853 }
 0x77d   : > { %2557 = vst.msk [vmem:[%s3133_s17 + $0x4] sm:$0xf] %vm851_vm10, %v854_v1  ;;  %v2001_v61 = vmul.f32 %v2000_v60, %v2000_v60 }
 0x77f   : > { %v2002_v62 = vsel %vm741_vm1, %v2001_v61, 0.0 }
 0x780   : > { %2003 = vadd.xlane.f32.xlu0 %v2002_v62 }
 0x796   : > { %848 = vrot.lane.b32.xlu0 %v2605_v57, %s2913_s13  ;;  %s3543_s13 = sld [smem:[#allocation20_spill]] (!%p2593_p12) }
 0x809   : > { %v2004_v3 = vpop.xlane.xlu0 %2003 }
 0x80a   : > { %v2005_v4 = vmul.f32 0.03125, %v2004_v3 }
 0x80c   : > { %v2006_v5 = vadd.f32 1e-05, %v2005_v4 }
 0x80d   : > { %v849_v6 = vpop.permute.xlu0 %848 }
 0x80e   : > { %2842 = vrsqrt.f32 %v2006_v5  ;;  %852 = vst.msk [vmem:[%s3133_s17] sm:$0xf] %vm851_vm10, %v849_v6  ;;  %vm2009_vm11 = vcmp.eq.f32.partialorder %v2006_v5, inf  ;;  %v2012_v7 = vand.u32 2147483648, %v2006_v5  ;;  %vm2011_vm12 = vcmp.eq.f32.partialorder %v2006_v5, 0.0 }
 0x81b   : > { %v2843_v8 = vpop.eup %2842 }
 0x81c   : > { %v2008_v10 = vmul.f32 %v2843_v8, %v2006_v5 }
 0x81e   : > { %v2010_v11 = vsel %vm2009_vm11, %v2006_v5, %v2008_v10 }
 0x81f   : > { %v2013_v12 = vsel %vm2011_vm12, %v2012_v7, %v2010_v11 }
 0x820   : > { %2844 = vrcp.f32 %v2013_v12 }
 0x82d   : > { %v2845_v13 = vpop.eup %2844 }
 0x82e   : > { %v2015_v15 = vmul.f32 %v2845_v13, %v2000_v60 }
 0x830   : > { %v2022_v17 = vmul.f32 %v2578_v14, %v2015_v15 }
 0x832   : > { %v2029_v18 = vadd.f32 %v2579_v16, %v2022_v17 }
 0x834   : > { %v2034_v19 = vpack.c.bf16 %v2029_v18, %v2029_v18 }
 0x836   : > { %2709 = vmatmul.mubr.msk.bf16.vlgmr.msra.gmra.mxu0 %vm741_vm1, %v2034_v19 }
 0x8f6   : > { %v2091_v23 = vpop.f32.mrf.mxu0 }
 0x8f7   : > { %v2092_v63 = vadd.f32 %v2580_v59, %v2091_v23 }
 0x8f8   : > { %v2710_v0 = vpop.f32.mrf.mxu0 }
 0x8f9   : > { %v2098_v24 = vmul.f32 %v2092_v63, %v2092_v63  ;;  %v2097_v9 = vmul.f32 0.5, %v2092_v63 }
 0x8fa   : > { %v2094_v25 = vpop.f32.mrf.mxu0 }
 0x8fb   : > { %v2099_v26 = vmul.f32 %v2098_v24, %v2092_v63 }
 0x8fc   : > { %v2711_v27 = vpop.f32.mrf.mxu0 }
 0x8fd   : > { %v2100_v29 = vmul.f32 0.044715, %v2099_v26 }
 0x8ff   : > { %v2101_v37 = vadd.f32 %v2100_v29, %v2092_v63 }
 0x901   : > { %v2102_v30 = vmul.f32 0.7978846, %v2101_v37 }
 0x903   : > { %2846 = vtanh.f32 %v2102_v30 }
 0x910   : > { %v2847_v31 = vpop.eup %2846 }
 0x911   : > { %v2104_v35 = vadd.f32 1.0, %v2847_v31 }
 0x913   : > { %v2105_v36 = vmul.f32 %v2104_v35, %v2097_v9 }
 0x915   : > { %v2122_v45 = vpack.c.bf16 %v2105_v36, %v2105_v36 }
 0x917   : > { %2729 = vmatmul.mubr.bf16.vlgmr.msra.gmra.mxu1 %v2122_v45 }
 0x9d7   : > { %v2212_v40 = vpop.f32.mrf.mxu1 }
 0x9d8   : > { %v2213_v41 = vadd.f32 %v2584_v38, %v2212_v40 }
 0x9d9   : > { %v2730_v42 = vpop.f32.mrf.mxu1  ;;  %2223 = sbr.rel (%p2593_p12) target bundleno = 2859 (0xb2b), region = 88 }
 0x9da   : > { %v2218_v43 = vadd.f32 %v2213_v41, %v3383_v50 }
 0x9db   : > { %v2215_v55 = vpop.f32.mrf.mxu1 }
 0x9dc   : > { %2219 = vst.msk [vmem:[#allocation2] sm:$0xff] %vm741_vm1, %v2218_v43 }
 0x9dd   : > { %v2731_v44 = vpop.f32.mrf.mxu1 }
 0x9de   : > { %v2594_v28 = vld [vmem:[%s3543_s13] ss:$0 sm:$0xff] }
 0x9df   : > { %v2595_v4 = vld [vmem:[%s3544_s15] ss:$0 sm:$0xff] }
 0x9e3   : > { %v2224_v46 = vld [vmem:[#allocation2] sm:$0xff] }
 0x9e4   : > { %v2227_v47 = vsel %vm741_vm1, %v2224_v46, 0.0 }
 0x9e5   : > { %2228 = vadd.xlane.f32.xlu0 %v2227_v47 }
 0xa6e   : > { %v2229_v48 = vpop.xlane.xlu0 %2228 }
 0xa6f   : > { %v2230_v49 = vmul.f32 0.03125, %v2229_v48 }
 0xa71   : > { %v2231_v51 = vsub.f32 %v2224_v46, %v2230_v49 }
 0xa73   : > { %v2232_v52 = vmul.f32 %v2231_v51, %v2231_v51 }
 0xa75   : > { %v2233_v54 = vsel %vm741_vm1, %v2232_v52, 0.0 }
 0xa76   : > { %2234 = vadd.xlane.f32.xlu0 %v2233_v54 }
 0xaff   : > { %v2235_v57 = vpop.xlane.xlu0 %2234 }
 0xb00   : > { %v2236_v50 = vmul.f32 0.03125, %v2235_v57 }
 0xb02   : > { %v2237_v33 = vadd.f32 1e-05, %v2236_v50 }
 0xb04   : > { %2848 = vrsqrt.f32 %v2237_v33  ;;  %vm2240_vm13 = vcmp.eq.f32.partialorder %v2237_v33, inf  ;;  %v2243_v1 = vand.u32 2147483648, %v2237_v33  ;;  %vm2242_vm14 = vcmp.eq.f32.partialorder %v2237_v33, 0.0 }
 0xb11   : > { %v2849_v32 = vpop.eup %2848 }
 0xb12   : > { %v2239_v60 = vmul.f32 %v2849_v32, %v2237_v33 }
 0xb14   : > { %v2241_v61 = vsel %vm2240_vm13, %v2237_v33, %v2239_v60 }
 0xb15   : > { %v2244_v62 = vsel %vm2242_vm14, %v2243_v1, %v2241_v61 }
 0xb16   : > { %2850 = vrcp.f32 %v2244_v62 }
 0xb23   : > { %v2851_v2 = vpop.eup %2850 }
 0xb24   : > { %v2246_v3 = vmul.f32 %v2851_v2, %v2231_v51 }
 0xb26   : > { %v2253_v5 = vmul.f32 %v2594_v28, %v2246_v3 }
 0xb28   : > { %v2260_v6 = vadd.f32 %v2595_v4, %v2253_v5 }
 0xb2a   : > { %2261 = vst.msk [vmem:[%s3131_s2] sm:$0xff] %vm741_vm1, %v2260_v6 }
 0xb2b PF: > { %2275 = sbr.rel (!%p3051_p5) target bundleno = 2870 (0xb36), region = 96  ;;  %s3546_s5 = sld [smem:[#allocation5_spill]] (%p3051_p5)  ;;  %v2296_v8 = vld [vmem:[%s3133_s17] sm:$0xf] (%p3051_p5)  ;;  %v2298_v10 = vld [vmem:[%s3133_s17 + $0x4] sm:$0xf] (%p3051_p5) }
 0xb2c   : > { %s3547_s23 = sld [smem:[#allocation6_spill]] (%p3051_p5) }
 0xb2d   : > { %s3548_s18 = sld [smem:[#allocation23_spill]] (%p3051_p5) }
 0xb31   : > { %s2597_s26 = sshll.u32 %s3546_s5, 1 }
 0xb32   : > { %s2277_s25 = sadd.s32 %s3547_s23, %s2597_s26 }
 0xb33   : > { %s2598_s28 = sshll.u32 %s2277_s25, 2 }
 0xb34   : > { %s2279_s19 = scalar_lea.vmem %s3548_s18, %s2598_s28 }
 0xb35   : > { %2297 = vst [vmem:[%s2279_s19] sm:$0xf] %v2296_v8  ;;  %2299 = vst [vmem:[%s2279_s19 + $0x10] sm:$0xf] %v2298_v10 }
 0xb36 PF: > { %s3549_s2 = sld [smem:[#allocation9_spill]] }
 0xb37   : > { %s3550_s21 = sld [smem:[#allocation4_spill]] }
 0xb38   : > { %s3551_s22 = sld [smem:[#allocation13_spill]] }
 0xb39   : > { %s3552_s23 = sld [smem:[#allocation7_spill]] }
 0xb3a   : > { %s3553_s24 = sld [smem:[#allocation8_spill]] }
 0xb3b   : > { %s3554_s25 = sld [smem:[#allocation10_spill]] }
 0xb3c   : > { %s27_s27 = sadd.s32 1, %s3549_s2   ;;  %s3555_s26 = sld [smem:[#allocation12_spill]] }
 0xb3d   : > { %p24_p13 = scmp.ge.s32.totalorder %s27_s27, 6  }
 0xb3f   :  { %26 = sbr.rel (!%p24_p13) target bundleno = 15 (0xf), region = 208 }

</bundles_post_ra>
